<compile_context>
chip_gen: v7x
topology: tpu7x:2x2x1
jax: 0.10.0
libtpu: 0.0.40
codegen_flags: <defaults>
</compile_context>

<pallas_src>
import jax
import jax.numpy as jnp
from jax.experimental import pallas as pl
from jax.experimental.pallas import tpu as pltpu

# ----------------------------- module config (mirrors __init__) ---------------------
ATOM_TYS = ["N", "CA", "CA", "CB"]            # pairs: (N, CA), (CA, CB)
STEP, D_MIN, D_MAX = 0.4, 2.5, 20.0
_BINS = jnp.arange(D_MIN, D_MAX + 2 * STEP, STEP)
NUM_BINS = int(_BINS.shape[0])                 # 46
NUM_PAIRS = len(ATOM_TYS) // 2                 # 2
ATOM_PAIRS = [(ATOM_TYS[2 * i], ATOM_TYS[2 * i + 1]) for i in range(NUM_PAIRS)]
DIM_IN = 32
DIM_HIDDEN = NUM_PAIRS * NUM_BINS              # 92
LN_EPS = 1e-5

LANES = 128
DOUT_PAD = ((DIM_HIDDEN + LANES - 1) // LANES) * LANES   # 128: both pairs in one tile
NEG_BIG = -1e30                                 # "excluded" value for masked max
TM_DEFAULT = 2048                               # rows (pair positions) per grid step
NCORES = 2                                      # leading "parallel" axis (megacore)


# ----------------------------- Pallas kernel ----------------------------------------
def _pair_dist_loss_kernel(x_ref, w_ref, b_ref, lbl_ref,
                           loss_ref, cnt_ref, acc_loss, acc_cnt):
    i = pl.program_id(1)

    @pl.when(i == 0)
    def _init():
        acc_loss[...] = jnp.zeros_like(acc_loss)
        acc_cnt[...] = jnp.zeros_like(acc_cnt)

    # ---- LayerNorm (affine already folded into W / b by the wrapper) ----
    x = x_ref[...].astype(jnp.float32)                      # (TM, DIM_IN)
    mu = jnp.mean(x, axis=-1, keepdims=True)
    xc = x - mu
    var = jnp.mean(xc * xc, axis=-1, keepdims=True)
    xhat = xc * jax.lax.rsqrt(var + LN_EPS)

    # ---- single Linear for all atom pairs, packed into one lane tile ----
    lg = jnp.dot(xhat, w_ref[...],
                 preferred_element_type=jnp.float32) + b_ref[...]   # (TM, DOUT_PAD)

    tm = x.shape[0]
    lane = jax.lax.broadcasted_iota(jnp.int32, (tm, DOUT_PAD), 1)
    lbl = lbl_ref[...]                                       # (TM, P) int32, -1 = masked

    # lane-group masks: pair p owns lanes [p*NUM_BINS, (p+1)*NUM_BINS)
    grps = [jnp.logical_and(lane >= p * NUM_BINS, lane < (p + 1) * NUM_BINS)
            for p in range(NUM_PAIRS)]

    # per-pair masked max (numerically stable per-pair softmax)
    m_p = [jnp.max(jnp.where(g, lg, NEG_BIG), axis=-1, keepdims=True) for g in grps]

    # broadcast each pair's max back onto its lanes (dead lanes get last pair's max)
    mx = m_p[-1]
    for p in range(NUM_PAIRS - 2, -1, -1):
        mx = jnp.where(grps[p], m_p[p], mx)

    e = jnp.exp(lg - mx)                                     # one EUP pass, one lane tile

    row_loss = jnp.zeros((tm, 1), jnp.float32)
    row_cnt = jnp.zeros((tm, 1), jnp.float32)
    tgt_w = jnp.zeros((tm, DOUT_PAD), jnp.float32)
    for p in range(NUM_PAIRS):                               # static unroll (P = 2)
        lbl_p = lbl[:, p:p + 1]                              # (TM, 1)
        msk_p = (lbl_p >= 0).astype(jnp.float32)             # (TM, 1)
        s_p = jnp.sum(jnp.where(grps[p], e, 0.0), axis=-1, keepdims=True)
        lse_p = jnp.log(s_p) + m_p[p]
        row_loss = row_loss + msk_p * lse_p
        row_cnt = row_cnt + msk_p
        # per-row one-hot weight for this pair's target lane (0 if masked / padded)
        tgt_w = tgt_w + jnp.where(lane == lbl_p + p * NUM_BINS, msk_p, 0.0)

    # single fused reduction extracts (mask-weighted) target logits for ALL pairs
    row_loss = row_loss - jnp.sum(tgt_w * lg, axis=-1, keepdims=True)

    acc_loss[...] += row_loss
    acc_cnt[...] += row_cnt

    # scalar cross-sublane reduce + store only on the last inner step
    @pl.when(i == pl.num_programs(1) - 1)
    def _finish():
        loss_ref[...] = jnp.sum(acc_loss[...], axis=0, keepdims=True)
        cnt_ref[...] = jnp.sum(acc_cnt[...], axis=0, keepdims=True)


def pair_dist_loss_pallas(pair_output, gamma, beta, W, bias, labels, full_mask,
                          tm=TM_DEFAULT, ncores=NCORES):
    """Masked-mean cross-entropy loss (scalar), matching reduce=True."""
    b, n, m_, dim_in = pair_output.shape
    R = b * n * m_

    x = pair_output.reshape(R, dim_in)                          # native dtype, row-major
    lbl = labels.reshape(R, NUM_PAIRS).astype(jnp.int32)
    msk = full_mask.reshape(R, NUM_PAIRS)
    lbl_enc = jnp.where(msk, lbl, -1)                           # mask folded into labels

    # adaptive tile: big for real protein sizes, minimal padding for tiny inputs
    per_core = -(-R // ncores)
    tm_eff = max(8, min(tm, ((per_core + 7) // 8) * 8))
    steps = -(-R // (ncores * tm_eff))
    R_pad = ncores * steps * tm_eff
    if R_pad != R:
        pad = R_pad - R
        x = jnp.pad(x, ((0, pad), (0, 0)))
        lbl_enc = jnp.pad(lbl_enc, ((0, pad), (0, 0)), constant_values=-1)

    # fold LayerNorm affine into the Linear:  (xhat*g + be) @ W + c
    #                                      == xhat @ (g[:,None]*W) + (be @ W + c)
    Wf = gamma.astype(jnp.float32)[:, None] * W.astype(jnp.float32)          # (32, 92)
    bf = bias.astype(jnp.float32) + beta.astype(jnp.float32) @ W.astype(jnp.float32)
    w_pad = jnp.pad(Wf, ((0, 0), (0, DOUT_PAD - DIM_HIDDEN)))                # (32, 128)
    b_pad = jnp.pad(bf, (0, DOUT_PAD - DIM_HIDDEN)).reshape(1, DOUT_PAD)     # (1, 128)
    # dead lanes (92..127) have zero weight/bias and are excluded by lane-group masks

    grid = (ncores, steps)

    loss_parts, cnt_parts = pl.pallas_call(
        _pair_dist_loss_kernel,
        out_shape=(jax.ShapeDtypeStruct((ncores, 1, 1), jnp.float32),
                   jax.ShapeDtypeStruct((ncores, 1, 1), jnp.float32)),
        grid_spec=pltpu.PrefetchScalarGridSpec(
            num_scalar_prefetch=0,
            grid=grid,
            in_specs=[
                pl.BlockSpec((tm_eff, dim_in), lambda c, i: (c * steps + i, 0)),     # x
                pl.BlockSpec((dim_in, DOUT_PAD), lambda c, i: (0, 0)),               # W'
                pl.BlockSpec((1, DOUT_PAD), lambda c, i: (0, 0)),                    # b'
                pl.BlockSpec((tm_eff, NUM_PAIRS), lambda c, i: (c * steps + i, 0)),  # labels
            ],
            out_specs=(pl.BlockSpec((None, 1, 1), lambda c, i: (c, 0, 0)),
                       pl.BlockSpec((None, 1, 1), lambda c, i: (c, 0, 0))),
            scratch_shapes=[pltpu.VMEM((tm_eff, 1), jnp.float32),
                            pltpu.VMEM((tm_eff, 1), jnp.float32)],
        ),
        compiler_params=pltpu.CompilerParams(
            dimension_semantics=("parallel", "arbitrary")),
    )(x, w_pad, b_pad, lbl_enc)

    return jnp.sum(loss_parts) / jnp.sum(cnt_parts)


# ----------------------------- label / mask prep (torch.no_grad part) ---------------
def build_labels_and_mask(atom_ty_map, atom_coords, atom_masks, pair_mask):
    dists, masks = [], []
    for a1, a2 in ATOM_PAIRS:
        c1 = atom_coords[:, :, atom_ty_map[a1]]                # (b, n, 3)
        c2 = atom_coords[:, :, atom_ty_map[a2]]
        diff = c1[:, :, None, :] - c2[:, None, :, :]
        dists.append(jnp.sqrt(jnp.sum(diff * diff, axis=-1)))  # torch.cdist (p=2)
        m1 = atom_masks[:, :, atom_ty_map[a1]]
        m2 = atom_masks[:, :, atom_ty_map[a2]]
        m = jnp.logical_and(m1[:, :, None], m2[:, None, :])
        if pair_mask is not None:
            m = jnp.logical_and(m, pair_mask)
        masks.append(m)
    full_dists = jnp.stack(dists, axis=-1)                     # (b, n, n, P)
    full_mask = jnp.stack(masks, axis=-1)                      # (b, n, n, P)
    d = jnp.clip(full_dists, D_MIN, D_MAX + STEP) - D_MIN
    labels = jnp.round(d / STEP).astype(jnp.int32)             # int labels (no one-hot)
    return labels, full_mask


# ----------------------------- pure-JAX reference for verification ------------------
def reference_loss(pair_output, gamma, beta, W, bias, labels, full_mask):
    b, n, m_, dim_in = pair_output.shape
    x = pair_output.reshape(-1, dim_in).astype(jnp.float32)
    mu = x.mean(-1, keepdims=True)
    var = ((x - mu) ** 2).mean(-1, keepdims=True)
    y = (x - mu) / jnp.sqrt(var + LN_EPS) * gamma.reshape(1, -1) + beta.reshape(1, -1)
    logits = (y @ W + bias).reshape(-1, NUM_PAIRS, NUM_BINS)
    logp = jax.nn.log_softmax(logits, axis=-1)
    tgt = jnp.take_along_axis(logp, labels.reshape(-1, NUM_PAIRS, 1), axis=-1)[..., 0]
    ce = -tgt
    m = full_mask.reshape(-1, NUM_PAIRS).astype(jnp.float32)
    return jnp.sum(ce * m) / jnp.sum(m)


# ----------------------------- main --------------------------------------------------
if __name__ == "__main__":
    key = jax.random.PRNGKey(0)
    kw, kb, kg, kbe, kx, kc, kam, kpm = jax.random.split(key, 8)

    b, n, n_atoms = 2, 8, 4
    atom_ty_map = {"N": 0, "CA": 1, "CB": 2, "O": 3}

    # deterministic synthetic parameters (shapes from PairDistLossNet.__init__);
    # non-trivial gamma/beta so the LN-affine folding is actually exercised
    W = jax.random.normal(kw, (DIM_IN, DIM_HIDDEN), jnp.float32) / jnp.sqrt(DIM_IN)
    bias = jax.random.normal(kb, (DIM_HIDDEN,), jnp.float32) * 0.01
    gamma = 1.0 + 0.1 * jax.random.normal(kg, (DIM_IN,), jnp.float32)
    beta = 0.05 * jax.random.normal(kbe, (DIM_IN,), jnp.float32)

    # deterministic synthetic inputs
    pair_output = jax.random.normal(kx, (b, n, n, DIM_IN), jnp.float32)
    atom_coords = jax.random.normal(kc, (b, n, n_atoms, 3), jnp.float32) * 5.0
    atom_masks = jax.random.bernoulli(kam, 0.9, (b, n, n_atoms))
    pair_mask = jax.random.bernoulli(kpm, 0.9, (b, n, n))

    labels, full_mask = build_labels_and_mask(atom_ty_map, atom_coords,
                                              atom_masks, pair_mask)

    loss = pair_dist_loss_pallas(pair_output, gamma, beta, W, bias, labels, full_mask)
    loss = jax.block_until_ready(loss)

    ref = reference_loss(pair_output, gamma, beta, W, bias, labels, full_mask)
    assert jnp.allclose(loss, ref, rtol=1e-3, atol=1e-3), (loss, ref)

    # TODO(synk): reduce=False / return_logits / use_hidden=True / smoothing>0 paths
    # not implemented (module defaults cover the forward used here).
    print("KERNEL_OK")
</pallas_src>

<mosaic_0001>
module attributes {stable_mosaic.version = 11 : i64} {
  func.func @_pair_dist_loss_kernel(%arg0: i32, %arg1: i32, %arg2: memref<64x32xf32, #tpu.memory_space<vmem>>, %arg3: memref<32x128xf32, #tpu.memory_space<vmem>>, %arg4: memref<1x128xf32, #tpu.memory_space<vmem>>, %arg5: memref<64x2xi32, #tpu.memory_space<vmem>>, %arg6: memref<1x1x1xf32, #tpu.memory_space<vmem>>, %arg7: memref<1x1x1xf32, #tpu.memory_space<vmem>>, %arg8: memref<64x1xf32, #tpu.memory_space<vmem>>, %arg9: memref<64x1xf32, #tpu.memory_space<vmem>>) attributes {dimension_semantics = [#tpu.dimension_semantics<parallel>, #tpu.dimension_semantics<arbitrary>], iteration_bounds = array<i64: 2, 1>, scalar_prefetch = 0 : i64, scratch_operands = 2 : i64, tpu.core_type = #tpu.core_type<tc>, window_params = [{transform_indices = @transform_0, window_bounds = array<i64: 64, 32>}, {pipeline_mode = #tpu.pipeline_mode<synchronous>, transform_indices = @transform_1, window_bounds = array<i64: 32, 128>}, {pipeline_mode = #tpu.pipeline_mode<synchronous>, transform_indices = @transform_2, window_bounds = array<i64: 1, 128>}, {transform_indices = @transform_3, window_bounds = array<i64: 64, 2>}, {transform_indices = @transform_4, window_bounds = array<i64: 1, 1, 1>}, {transform_indices = @transform_5, window_bounds = array<i64: 1, 1, 1>}]} {
    %c0_i32 = arith.constant 0 : i32
    %0 = arith.cmpi eq, %arg1, %c0_i32 : i32
    %1 = arith.extui %0 : i1 to i32
    %c0_i32_0 = arith.constant 0 : i32
    %2 = arith.cmpi ne, %1, %c0_i32_0 : i32
    scf.if %2 {
      %cst_43 = arith.constant 0.000000e+00 : f32
      %114 = vector.broadcast %cst_43 : f32 to vector<64x1xf32>
      %c0_44 = arith.constant 0 : index
      %c0_45 = arith.constant 0 : index
      %115 = vector.load %arg8[%c0_44, %c0_45] : memref<64x1xf32, #tpu.memory_space<vmem>>, vector<64x1xf32>
      tpu.vector_store %arg8[%c0_44, %c0_45], %114 {strides = array<i32>} : memref<64x1xf32, #tpu.memory_space<vmem>>, vector<64x1xf32>,
      %cst_46 = arith.constant 0.000000e+00 : f32
      %116 = vector.broadcast %cst_46 : f32 to vector<64x1xf32>
      %c0_47 = arith.constant 0 : index
      %c0_48 = arith.constant 0 : index
      %117 = vector.load %arg9[%c0_47, %c0_48] : memref<64x1xf32, #tpu.memory_space<vmem>>, vector<64x1xf32>
      tpu.vector_store %arg9[%c0_47, %c0_48], %116 {strides = array<i32>} : memref<64x1xf32, #tpu.memory_space<vmem>>, vector<64x1xf32>,
    } else {
    }
    %c0 = arith.constant 0 : index
    %c0_1 = arith.constant 0 : index
    %3 = vector.load %arg2[%c0, %c0_1] : memref<64x32xf32, #tpu.memory_space<vmem>>, vector<64x32xf32>
    %cst = arith.constant dense<0.000000e+00> : vector<64xf32>
    %4 = vector.multi_reduction <add>, %3, %cst [1] : vector<64x32xf32> to vector<64xf32>
    %5 = vector.shape_cast %4 : vector<64xf32> to vector<64x1xf32>
    %cst_2 = arith.constant 3.200000e+01 : f32
    %6 = vector.broadcast %cst_2 : f32 to vector<64x1xf32>
    %7 = arith.divf %5, %6 : vector<64x1xf32>
    %8 = vector.broadcast %7 : vector<64x1xf32> to vector<64x32xf32>
    %9 = arith.subf %3, %8 : vector<64x32xf32>
    %10 = arith.mulf %9, %9 : vector<64x32xf32>
    %cst_3 = arith.constant dense<0.000000e+00> : vector<64xf32>
    %11 = vector.multi_reduction <add>, %10, %cst_3 [1] : vector<64x32xf32> to vector<64xf32>
    %12 = vector.shape_cast %11 : vector<64xf32> to vector<64x1xf32>
    %cst_4 = arith.constant 3.200000e+01 : f32
    %13 = vector.broadcast %cst_4 : f32 to vector<64x1xf32>
    %14 = arith.divf %12, %13 : vector<64x1xf32>
    %cst_5 = arith.constant 9.99999974E-6 : f32
    %15 = vector.broadcast %cst_5 : f32 to vector<64x1xf32>
    %16 = arith.addf %14, %15 : vector<64x1xf32>
    %17 = math.rsqrt %16 : vector<64x1xf32>
    %18 = vector.broadcast %17 : vector<64x1xf32> to vector<64x32xf32>
    %19 = arith.mulf %9, %18 : vector<64x32xf32>
    %c0_6 = arith.constant 0 : index
    %c0_7 = arith.constant 0 : index
    %20 = vector.load %arg3[%c0_6, %c0_7] : memref<32x128xf32, #tpu.memory_space<vmem>>, vector<32x128xf32>
    %cst_8 = arith.constant dense<0.000000e+00> : vector<64x128xf32>
    %21 = tpu.matmul %19, %20, %cst_8 {dimension_numbers = #tpu.dot_dimension_numbers<[1], [0], [0], [1], [0, 0, 1, 1], [], []>} : vector<64x32xf32>, vector<32x128xf32>, vector<64x128xf32> -> vector<64x128xf32>
    %c0_9 = arith.constant 0 : index
    %c0_10 = arith.constant 0 : index
    %22 = vector.load %arg4[%c0_9, %c0_10] : memref<1x128xf32, #tpu.memory_space<vmem>>, vector<1x128xf32>
    %23 = vector.broadcast %22 : vector<1x128xf32> to vector<64x128xf32>
    %24 = arith.addf %21, %23 : vector<64x128xf32>
    %25 = tpu.iota {dimensions = array<i32: 1>} : vector<64x128xi32>
    %c0_11 = arith.constant 0 : index
    %c0_12 = arith.constant 0 : index
    %26 = vector.load %arg5[%c0_11, %c0_12] : memref<64x2xi32, #tpu.memory_space<vmem>>, vector<64x2xi32>
    %c0_i32_13 = arith.constant 0 : i32
    %27 = vector.broadcast %c0_i32_13 : i32 to vector<64x128xi32>
    %28 = arith.cmpi sge, %25, %27 : vector<64x128xi32>
    %c46_i32 = arith.constant 46 : i32
    %29 = vector.broadcast %c46_i32 : i32 to vector<64x128xi32>
    %30 = arith.cmpi slt, %25, %29 : vector<64x128xi32>
    %31 = arith.andi %28, %30 : vector<64x128xi1>
    %c46_i32_14 = arith.constant 46 : i32
    %32 = vector.broadcast %c46_i32_14 : i32 to vector<64x128xi32>
    %33 = arith.cmpi sge, %25, %32 : vector<64x128xi32>
    %c92_i32 = arith.constant 92 : i32
    %34 = vector.broadcast %c92_i32 : i32 to vector<64x128xi32>
    %35 = arith.cmpi slt, %25, %34 : vector<64x128xi32>
    %36 = arith.andi %33, %35 : vector<64x128xi1>
    %cst_15 = arith.constant -1.000000e+30 : f32
    %37 = vector.broadcast %cst_15 : f32 to vector<64x128xf32>
    %38 = arith.select %31, %24, %37 : vector<64x128xi1>, vector<64x128xf32>
    %cst_16 = arith.constant dense<0xFF800000> : vector<64xf32>
    %39 = vector.multi_reduction <maximumf>, %38, %cst_16 [1] : vector<64x128xf32> to vector<64xf32>
    %40 = vector.shape_cast %39 : vector<64xf32> to vector<64x1xf32>
    %cst_17 = arith.constant -1.000000e+30 : f32
    %41 = vector.broadcast %cst_17 : f32 to vector<64x128xf32>
    %42 = arith.select %36, %24, %41 : vector<64x128xi1>, vector<64x128xf32>
    %cst_18 = arith.constant dense<0xFF800000> : vector<64xf32>
    %43 = vector.multi_reduction <maximumf>, %42, %cst_18 [1] : vector<64x128xf32> to vector<64xf32>
    %44 = vector.shape_cast %43 : vector<64xf32> to vector<64x1xf32>
    %45 = vector.shape_cast %40 : vector<64x1xf32> to vector<64x1xf32>
    %46 = vector.broadcast %45 : vector<64x1xf32> to vector<64x128xf32>
    %47 = vector.shape_cast %44 : vector<64x1xf32> to vector<64x1xf32>
    %48 = vector.broadcast %47 : vector<64x1xf32> to vector<64x128xf32>
    %49 = arith.select %31, %46, %48 : vector<64x128xi1>, vector<64x128xf32>
    %50 = arith.subf %24, %49 : vector<64x128xf32>
    %51 = math.exp %50 : vector<64x128xf32>
    %cst_19 = arith.constant 0.000000e+00 : f32
    %52 = vector.broadcast %cst_19 : f32 to vector<64x1xf32>
    %cst_20 = arith.constant 0.000000e+00 : f32
    %53 = vector.broadcast %cst_20 : f32 to vector<64x1xf32>
    %cst_21 = arith.constant 0.000000e+00 : f32
    %54 = vector.broadcast %cst_21 : f32 to vector<64x128xf32>
    %55 = vector.extract_strided_slice %26 {offsets = [0, 0], sizes = [64, 1], strides = [1, 1]} : vector<64x2xi32> to vector<64x1xi32>
    %c0_i32_22 = arith.constant 0 : i32
    %56 = vector.broadcast %c0_i32_22 : i32 to vector<64x1xi32>
    %57 = arith.cmpi sge, %55, %56 : vector<64x1xi32>
    %58 = arith.extui %57 : vector<64x1xi1> to vector<64x1xi32>
    %59 = arith.sitofp %58 : vector<64x1xi32> to vector<64x1xf32>
    %cst_23 = arith.constant 0.000000e+00 : f32
    %60 = vector.broadcast %cst_23 : f32 to vector<64x128xf32>
    %61 = arith.select %31, %51, %60 : vector<64x128xi1>, vector<64x128xf32>
    %cst_24 = arith.constant dense<0.000000e+00> : vector<64xf32>
    %62 = vector.multi_reduction <add>, %61, %cst_24 [1] : vector<64x128xf32> to vector<64xf32>
    %63 = vector.shape_cast %62 : vector<64xf32> to vector<64x1xf32>
    %64 = math.log %63 : vector<64x1xf32>
    %65 = arith.addf %64, %40 : vector<64x1xf32>
    %66 = arith.mulf %59, %65 : vector<64x1xf32>
    %67 = arith.addf %52, %66 : vector<64x1xf32>
    %68 = arith.addf %53, %59 : vector<64x1xf32>
    %c0_i32_25 = arith.constant 0 : i32
    %69 = vector.broadcast %c0_i32_25 : i32 to vector<64x1xi32>
    %70 = arith.addi %55, %69 : vector<64x1xi32>
    %71 = vector.broadcast %70 : vector<64x1xi32> to vector<64x128xi32>
    %72 = arith.cmpi eq, %25, %71 : vector<64x128xi32>
    %cst_26 = arith.constant 0.000000e+00 : f32
    %73 = vector.shape_cast %59 : vector<64x1xf32> to vector<64x1xf32>
    %74 = vector.broadcast %73 : vector<64x1xf32> to vector<64x128xf32>
    %75 = vector.broadcast %cst_26 : f32 to vector<64x128xf32>
    %76 = arith.select %72, %74, %75 : vector<64x128xi1>, vector<64x128xf32>
    %77 = arith.addf %54, %76 : vector<64x128xf32>
    %78 = vector.extract_strided_slice %26 {offsets = [0, 1], sizes = [64, 1], strides = [1, 1]} : vector<64x2xi32> to vector<64x1xi32>
    %c0_i32_27 = arith.constant 0 : i32
    %79 = vector.broadcast %c0_i32_27 : i32 to vector<64x1xi32>
    %80 = arith.cmpi sge, %78, %79 : vector<64x1xi32>
    %81 = arith.extui %80 : vector<64x1xi1> to vector<64x1xi32>
    %82 = arith.sitofp %81 : vector<64x1xi32> to vector<64x1xf32>
    %cst_28 = arith.constant 0.000000e+00 : f32
    %83 = vector.broadcast %cst_28 : f32 to vector<64x128xf32>
    %84 = arith.select %36, %51, %83 : vector<64x128xi1>, vector<64x128xf32>
    %cst_29 = arith.constant dense<0.000000e+00> : vector<64xf32>
    %85 = vector.multi_reduction <add>, %84, %cst_29 [1] : vector<64x128xf32> to vector<64xf32>
    %86 = vector.shape_cast %85 : vector<64xf32> to vector<64x1xf32>
    %87 = math.log %86 : vector<64x1xf32>
    %88 = arith.addf %87, %44 : vector<64x1xf32>
    %89 = arith.mulf %82, %88 : vector<64x1xf32>
    %90 = arith.addf %67, %89 : vector<64x1xf32>
    %91 = arith.addf %68, %82 : vector<64x1xf32>
    %c46_i32_30 = arith.constant 46 : i32
    %92 = vector.broadcast %c46_i32_30 : i32 to vector<64x1xi32>
    %93 = arith.addi %78, %92 : vector<64x1xi32>
    %94 = vector.broadcast %93 : vector<64x1xi32> to vector<64x128xi32>
    %95 = arith.cmpi eq, %25, %94 : vector<64x128xi32>
    %cst_31 = arith.constant 0.000000e+00 : f32
    %96 = vector.shape_cast %82 : vector<64x1xf32> to vector<64x1xf32>
    %97 = vector.broadcast %96 : vector<64x1xf32> to vector<64x128xf32>
    %98 = vector.broadcast %cst_31 : f32 to vector<64x128xf32>
    %99 = arith.select %95, %97, %98 : vector<64x128xi1>, vector<64x128xf32>
    %100 = arith.addf %77, %99 : vector<64x128xf32>
    %101 = arith.mulf %100, %24 : vector<64x128xf32>
    %cst_32 = arith.constant dense<0.000000e+00> : vector<64xf32>
    %102 = vector.multi_reduction <add>, %101, %cst_32 [1] : vector<64x128xf32> to vector<64xf32>
    %103 = vector.shape_cast %102 : vector<64xf32> to vector<64x1xf32>
    %104 = arith.subf %90, %103 : vector<64x1xf32>
    %c0_33 = arith.constant 0 : index
    %c0_34 = arith.constant 0 : index
    %105 = vector.load %arg8[%c0_33, %c0_34] : memref<64x1xf32, #tpu.memory_space<vmem>>, vector<64x1xf32>
    %106 = arith.addf %105, %104 : vector<64x1xf32>
    %c0_35 = arith.constant 0 : index
    %c0_36 = arith.constant 0 : index
    %107 = vector.load %arg8[%c0_35, %c0_36] : memref<64x1xf32, #tpu.memory_space<vmem>>, vector<64x1xf32>
    tpu.vector_store %arg8[%c0_35, %c0_36], %106 {strides = array<i32>} : memref<64x1xf32, #tpu.memory_space<vmem>>, vector<64x1xf32>,
    %c0_37 = arith.constant 0 : index
    %c0_38 = arith.constant 0 : index
    %108 = vector.load %arg9[%c0_37, %c0_38] : memref<64x1xf32, #tpu.memory_space<vmem>>, vector<64x1xf32>
    %109 = arith.addf %108, %91 : vector<64x1xf32>
    %c0_39 = arith.constant 0 : index
    %c0_40 = arith.constant 0 : index
    %110 = vector.load %arg9[%c0_39, %c0_40] : memref<64x1xf32, #tpu.memory_space<vmem>>, vector<64x1xf32>
    tpu.vector_store %arg9[%c0_39, %c0_40], %109 {strides = array<i32>} : memref<64x1xf32, #tpu.memory_space<vmem>>, vector<64x1xf32>,
    %c0_i32_41 = arith.constant 0 : i32
    %111 = arith.cmpi eq, %arg1, %c0_i32_41 : i32
    %112 = arith.extui %111 : i1 to i32
    %c0_i32_42 = arith.constant 0 : i32
    %113 = arith.cmpi ne, %112, %c0_i32_42 : i32
    scf.if %113 {
      %c0_43 = arith.constant 0 : index
      %c0_44 = arith.constant 0 : index
      %114 = vector.load %arg8[%c0_43, %c0_44] : memref<64x1xf32, #tpu.memory_space<vmem>>, vector<64x1xf32>
      %cst_45 = arith.constant dense<0.000000e+00> : vector<1xf32>
      %115 = vector.multi_reduction <add>, %114, %cst_45 [0] : vector<64x1xf32> to vector<1xf32>
      %116 = vector.shape_cast %115 : vector<1xf32> to vector<1x1xf32>
      %c0_46 = arith.constant 0 : index
      %c0_47 = arith.constant 0 : index
      %c0_48 = arith.constant 0 : index
      %117 = vector.load %arg6[%c0_46, %c0_47, %c0_48] : memref<1x1x1xf32, #tpu.memory_space<vmem>>, vector<1x1x1xf32>
      %118 = vector.shape_cast %117 : vector<1x1x1xf32> to vector<1x1xf32>
      %119 = vector.shape_cast %116 : vector<1x1xf32> to vector<1x1x1xf32>
      tpu.vector_store %arg6[%c0_46, %c0_47, %c0_48], %119 {strides = array<i32>} : memref<1x1x1xf32, #tpu.memory_space<vmem>>, vector<1x1x1xf32>,
      %c0_49 = arith.constant 0 : index
      %c0_50 = arith.constant 0 : index
      %120 = vector.load %arg9[%c0_49, %c0_50] : memref<64x1xf32, #tpu.memory_space<vmem>>, vector<64x1xf32>
      %cst_51 = arith.constant dense<0.000000e+00> : vector<1xf32>
      %121 = vector.multi_reduction <add>, %120, %cst_51 [0] : vector<64x1xf32> to vector<1xf32>
      %122 = vector.shape_cast %121 : vector<1xf32> to vector<1x1xf32>
      %c0_52 = arith.constant 0 : index
      %c0_53 = arith.constant 0 : index
      %c0_54 = arith.constant 0 : index
      %123 = vector.load %arg7[%c0_52, %c0_53, %c0_54] : memref<1x1x1xf32, #tpu.memory_space<vmem>>, vector<1x1x1xf32>
      %124 = vector.shape_cast %123 : vector<1x1x1xf32> to vector<1x1xf32>
      %125 = vector.shape_cast %122 : vector<1x1xf32> to vector<1x1x1xf32>
      tpu.vector_store %arg7[%c0_52, %c0_53, %c0_54], %125 {strides = array<i32>} : memref<1x1x1xf32, #tpu.memory_space<vmem>>, vector<1x1x1xf32>,
    } else {
    }
    return
  }
  func.func @transform_0(%arg0: i32, %arg1: i32) -> (i32, i32) {
    %c1_i32 = arith.constant 1 : i32
    %0 = arith.muli %arg0, %c1_i32 : i32
    %1 = arith.addi %0, %arg1 : i32
    %c0_i32 = arith.constant 0 : i32
    %c0_i32_0 = arith.constant 0 : i32
    return %1, %c0_i32 : i32, i32
  }
  func.func @transform_1(%arg0: i32, %arg1: i32) -> (i32, i32) {
    %c0_i32 = arith.constant 0 : i32
    %c0_i32_0 = arith.constant 0 : i32
    %c0_i32_1 = arith.constant 0 : i32
    return %c0_i32, %c0_i32_0 : i32, i32
  }
  func.func @transform_2(%arg0: i32, %arg1: i32) -> (i32, i32) {
    %c0_i32 = arith.constant 0 : i32
    %c0_i32_0 = arith.constant 0 : i32
    %c0_i32_1 = arith.constant 0 : i32
    return %c0_i32, %c0_i32_0 : i32, i32
  }
  func.func @transform_3(%arg0: i32, %arg1: i32) -> (i32, i32) {
    %c1_i32 = arith.constant 1 : i32
    %0 = arith.muli %arg0, %c1_i32 : i32
    %1 = arith.addi %0, %arg1 : i32
    %c0_i32 = arith.constant 0 : i32
    %c0_i32_0 = arith.constant 0 : i32
    return %1, %c0_i32 : i32, i32
  }
  func.func @transform_4(%arg0: i32, %arg1: i32) -> (i32, i32, i32) {
    %c0_i32 = arith.constant 0 : i32
    %c0_i32_0 = arith.constant 0 : i32
    %c0_i32_1 = arith.constant 0 : i32
    return %arg0, %c0_i32, %c0_i32_0 : i32, i32, i32
  }
  func.func @transform_5(%arg0: i32, %arg1: i32) -> (i32, i32, i32) {
    %c0_i32 = arith.constant 0 : i32
    %c0_i32_0 = arith.constant 0 : i32
    %c0_i32_1 = arith.constant 0 : i32
    return %arg0, %c0_i32, %c0_i32_0 : i32, i32, i32
  }
}

</mosaic_0001>

<bundles_post_ra>
// kernel: tpu_custom_call.1
= control target key start
LH: loop header
LB: loop body
LE: loop exit
PB: predicated region body
PF: predicated region fallthrough
CT: control target
= control target key end

     0   :  { %s1576_s18 = smov 0   ;;  %s1578_s19 = smov 0   ;;  %s2161_s0 = inlined_call_operand.vmem [shape: f32[128,32], index: 0, kind: input, shape index: {}]   ;;  %s2162_s1 = inlined_call_operand.vmem [shape: f32[32,128], index: 1, kind: input, shape index: {}]   ;;  %s2163_s2 = inlined_call_operand.vmem [shape: f32[1,128], index: 2, kind: input, shape index: {}]   ;;  %s2164_s3 = inlined_call_operand.vmem [shape: s32[128,2], index: 3, kind: input, shape index: {}]   ;;  %s2165_s4 = inlined_call_operand.vmem [shape: f32[2,1,1], index: 4, kind: output, shape index: {0}]   ;;  %s2166_s5 = inlined_call_operand.vmem [shape: f32[2,1,1], index: 5, kind: output, shape index: {1}]  }
   0x1   :  { %s1580_s20 = smov 0  }
   0x2 LB: > { %s28_s21 = sadd.s32 1, %s1536_s19  ;;  %p1292_p0 = scmp.ge.s32.totalorder %s1540_s20, 1  ;;  %s1540_s20 = sphi %s1580_s20, %s16_s20   ;;  %s1536_s19 = sphi %s1578_s19, %s2170_s19   ;;  %s1532_s18 = sphi %s1576_s18, %s2169_s18  }
   0x3   : > { %p30_p1 = scmp.ge.s32.totalorder %s28_s21, 2  ;;  %p222_p2 = scmp.lt.s32.totalorder %s1540_s20, 3 }
   0x5   : > { %s2172_s21 = smov (%p30_p1, %s28_s21), 0  ;;  %p223_p3 = pnand %p1292_p0, %p222_p2 }
   0x6   : > { %s1293_s22 = sshll.u32 (!%p223_p3), %s1532_s18, 3  ;;  %vm309_vm0 = vcmask (!%p223_p3), 261120   ;;  %v415_v56 = vld [vmem:[%s2162_s1] sm:$0xff] (!%p223_p3)  ;;  %v416_v57 = vld [vmem:[%s2162_s1 + $0x8] sm:$0xff] (!%p223_p3)  ;;  %v417_v59 = vld [vmem:[%s2162_s1 + $0x10] sm:$0xff] (!%p223_p3)  ;;  %v1542_v62 = vmov (!%p223_p3), 0  }
   0x7   : > { %226 = sbr.rel (%p223_p3) target bundleno = 1132 (0x46c), region = 36  ;;  %p260_p4 = scmp.lt.s32.totalorder (!%p223_p3), %s1293_s22, 15  ;;  %v1348_v58 = vpack.c.bf16 (!%p223_p3), %v416_v57, %v415_v56  ;;  %v418_v60 = vld [vmem:[%s2162_s1 + $0x18] sm:$0xff] (!%p223_p3)  ;;  %1388 = vset.pattern.permute.xlu1 (!%p223_p3), %v1542_v62 }
   0x8   : > { %v1352_v61 = vpack.c.bf16 (!%p223_p3), %v418_v60, %v417_v59  ;;  %s1545_s15 = smov (!%p223_p3), 127   ;;  %p274_p5 = scmp.lt.s32.totalorder (!%p223_p3), %s1532_s18, 1 }
   0x9   : > { %1349 = vmatprep.subr.bf16.mxu0 (!%p223_p3), %v1348_v58  ;;  %1356 = vmatprep.subr.bf16.mxu1 (!%p223_p3), %v1348_v58 }
   0xa   : > { %1351 = vmatpush3.bf16.msra.mxu0 (!%p223_p3), %v1348_v58  ;;  %1358 = vmatpush3.bf16.msra.mxu1 (!%p223_p3), %v1348_v58 }
   0xb   : > { %1353 = vmatprep.subr.bf16.mxu0 (!%p223_p3), %v1352_v61  ;;  %1357 = vmatprep.subr.bf16.mxu1 (!%p223_p3), %v1352_v61 }
   0xe   : > { %s2174_s22 = smov (!%p260_p4, %s1293_s22), 15  ;;  %1355 = vmatpush3.bf16.msra.mxu0 %v1352_v61  ;;  %1359 = vmatpush3.bf16.msra.mxu1 %v1352_v61  ;;  %s2176_s18 = smov (!%p274_p5, %s1532_s18), 1 }
   0xf   : > { %s1294_s23 = sshll.u32 %s2174_s22, 3  ;;  %s276_s22 = scalar_lea.vmem %s2165_s4, %s2176_s18 }
  0x10   : > { %s263_s26 = scalar_lea.vmem %s2161_s0, %s1294_s23  ;;  %s1670_s12 = scalar_lea.vmem %s2164_s3, %s1294_s23 }
  0x11   : > { %v301_v0 = vld [vmem:[%s263_s26] sm:$0xff]  ;;  %v303_v1 = vld [vmem:[%s263_s26 + $0x10] sm:$0xff]  ;;  %v302_v2 = vld [vmem:[%s263_s26 + $0x8] sm:$0xff]  ;;  %s279_s25 = scalar_lea.vmem %s2166_s5, %s2176_s18 }
  0x12   : > { %v310_v3 = vsel %vm309_vm0, %v301_v0, 0.0  ;;  %v316_v4 = vsel %vm309_vm0, %v303_v1, 0.0  ;;  %v304_v5 = vld [vmem:[%s263_s26 + $0x18] sm:$0xff]  ;;  %v313_v6 = vsel %vm309_vm0, %v302_v2, 0.0  ;;  %v305_v8 = vld [vmem:[%s263_s26 + $0x20] sm:$0xff]  ;;  %v306_v9 = vld [vmem:[%s263_s26 + $0x28] sm:$0xff] }
  0x13   : > { %311 = vadd.xlane.f32.xlu0 %v310_v3  ;;  %317 = vadd.xlane.f32.xlu1 %v316_v4  ;;  %v319_v7 = vsel %vm309_vm0, %v304_v5, 0.0  ;;  %v322_v10 = vsel %vm309_vm0, %v305_v8, 0.0  ;;  %v325_v11 = vsel %vm309_vm0, %v306_v9, 0.0  ;;  %v307_v12 = vld [vmem:[%s263_s26 + $0x30] sm:$0xff]  ;;  %v308_v13 = vld [vmem:[%s263_s26 + $0x38] sm:$0xff]  ;;  %v558_v63 = vld [vmem:[%s1670_s12 + $0x8] sm:$0xff] }
  0x14   : > { %v328_v14 = vsel %vm309_vm0, %v307_v12, 0.0  ;;  %v331_v15 = vsel %vm309_vm0, %v308_v13, 0.0  ;;  %v964_v3 = vadd.s32 46, %v558_v63  ;;  %vm652_vm3 = vcmp.ge.s32.totalorder %v558_v63, 0 }
  0x17   : > { %314 = vadd.xlane.f32.xlu0 %v313_v6  ;;  %320 = vadd.xlane.f32.xlu1 %v319_v7 }
  0x1b   : > { %323 = vadd.xlane.f32.xlu0 %v322_v10  ;;  %326 = vadd.xlane.f32.xlu1 %v325_v11  ;;  %v562_v11 = vld [vmem:[%s1670_s12 + $0x28] sm:$0xff] }
  0x1c   : > { %vm656_vm6 = vcmp.ge.s32.totalorder %v562_v11, 0 }
  0x1f   : > { %329 = vadd.xlane.f32.xlu0 %v328_v14  ;;  %332 = vadd.xlane.f32.xlu1 %v331_v15  ;;  %v1691_v14 = vld [vmem:[%s1670_s12 + $0x30] sm:$0xff] }
  0x20   : > { %v969_v15 = vadd.s32 46, %v1691_v14 }
  0xa0   : > { %v312_v16 = vpop.xlane.xlu0 %311  ;;  %v318_v17 = vpop.xlane.xlu1 %317 }
  0xa1   : > { %v335_v18 = vmul.f32 0.03125, %v312_v16  ;;  %v337_v19 = vmul.f32 0.03125, %v318_v17  ;;  %v1699_v17 = vld [vmem:[%s1670_s12 + $0x38] sm:$0xff] }
  0xa3   : > { %v1613_v20 = vsub.f32 %v301_v0, %v335_v18  ;;  %v1615_v21 = vsub.f32 %v303_v1, %v337_v19  ;;  %v559_v0 = vld [vmem:[%s1670_s12 + $0x10] sm:$0xff]  ;;  %v560_v1 = vld [vmem:[%s1670_s12 + $0x18] sm:$0xff] }
  0xa4   : > { %v315_v22 = vpop.xlane.xlu0 %314  ;;  %v321_v23 = vpop.xlane.xlu1 %320  ;;  %vm653_vm1 = vcmp.ge.s32.totalorder %v559_v0, 0  ;;  %vm654_vm2 = vcmp.ge.s32.totalorder %v560_v1, 0  ;;  %v965_v4 = vadd.s32 46, %v559_v0 }
  0xa5   : > { %v336_v24 = vmul.f32 0.03125, %v315_v22  ;;  %v338_v25 = vmul.f32 0.03125, %v321_v23  ;;  %v351_v26 = vmul.f32 %v1613_v20, %v1613_v20  ;;  %v353_v27 = vmul.f32 %v1615_v21, %v1615_v21 }
  0xa7   : > { %v1621_v28 = vsub.f32 %v302_v2, %v336_v24  ;;  %v1623_v29 = vsub.f32 %v304_v5, %v338_v25  ;;  %v359_v30 = vsel %vm309_vm0, %v351_v26, 0.0  ;;  %v365_v33 = vsel %vm309_vm0, %v353_v27, 0.0 }
  0xa8   : > { %360 = vadd.xlane.f32.xlu0 %v359_v30  ;;  %v324_v31 = vpop.xlane.xlu0 %323  ;;  %v327_v32 = vpop.xlane.xlu1 %326  ;;  %v1543_v2 = vmov 1   ;;  %v1544_v5 = vmov 0.0   ;;  %v966_v26 = vadd.s32 46, %v560_v1 }
  0xa9   : > { %v339_v34 = vmul.f32 0.03125, %v324_v31  ;;  %v340_v35 = vmul.f32 0.03125, %v327_v32  ;;  %v352_v36 = vmul.f32 %v1621_v28, %v1621_v28  ;;  %v354_v37 = vmul.f32 %v1623_v29, %v1623_v29  ;;  %1395 = vset.pattern.permute.xlu0 %v1543_v2 }
  0xaa   : > { %v1677_v6 = vsel %vm653_vm1, 1.0, %v1544_v5  ;;  %v1680_v7 = vsel %vm654_vm2, 1.0, %v1544_v5  ;;  %v1696_v16 = vsel %vm652_vm3, 1.0, %v1544_v5  ;;  %v1713_v23 = vsel %vm656_vm6, 1.0, %v1544_v5 }
  0xab   : > { %v1631_v38 = vsub.f32 %v305_v8, %v339_v34  ;;  %v1633_v39 = vsub.f32 %v306_v9, %v340_v35  ;;  %v362_v40 = vsel %vm309_vm0, %v352_v36, 0.0  ;;  %v368_v43 = vsel %vm309_vm0, %v354_v37, 0.0  ;;  %v561_v9 = vld [vmem:[%s1670_s12 + $0x20] sm:$0xff] }
  0xac   : > { %366 = vadd.xlane.f32.xlu0 %v365_v33  ;;  %363 = vadd.xlane.f32.xlu1 %v362_v40  ;;  %v330_v41 = vpop.xlane.xlu0 %329  ;;  %v333_v42 = vpop.xlane.xlu1 %332  ;;  %v1684_v8 = vpack.i.bf16 %v1680_v7, %v1677_v6  ;;  %v967_v10 = vadd.s32 46, %v561_v9  ;;  %vm655_vm5 = vcmp.ge.s32.totalorder %v561_v9, 0 }
  0xad   : > { %v341_v44 = vmul.f32 0.03125, %v330_v41  ;;  %v342_v45 = vmul.f32 0.03125, %v333_v42  ;;  %v355_v46 = vmul.f32 %v1631_v38, %v1631_v38  ;;  %v356_v47 = vmul.f32 %v1633_v39, %v1633_v39 }
  0xae   : > { %v1710_v22 = vsel %vm655_vm5, 1.0, %v1544_v5 }
  0xaf   : > { %v1641_v48 = vsub.f32 %v307_v12, %v341_v44  ;;  %v1643_v49 = vsub.f32 %v308_v13, %v342_v45  ;;  %v371_v50 = vsel %vm309_vm0, %v355_v46, 0.0  ;;  %v374_v51 = vsel %vm309_vm0, %v356_v47, 0.0  ;;  %v557_v13 = vld [vmem:[%s1670_s12] sm:$0xff] }
  0xb0   : > { %369 = vadd.xlane.f32.xlu1 %v368_v43  ;;  %372 = vadd.xlane.f32.xlu0 %v371_v50  ;;  %v968_v12 = vadd.s32 46, %v562_v11  ;;  %vm651_vm4 = vcmp.ge.s32.totalorder %v557_v13, 0  ;;  %v963_v24 = vadd.s32 46, %v557_v13  ;;  %v1719_v25 = vpack.i.bf16 %v1713_v23, %v1710_v22 }
  0xb1   : > { %v357_v52 = vmul.f32 %v1641_v48, %v1641_v48  ;;  %v358_v53 = vmul.f32 %v1643_v49, %v1643_v49  ;;  %v1702_v18 = vsel %vm651_vm4, 1.0, %v1544_v5 }
  0xb2   : > { %v1707_v19 = vpack.i.bf16 %v1696_v16, %v1702_v18 }
  0xb3   : > { %v377_v54 = vsel %vm309_vm0, %v357_v52, 0.0  ;;  %v380_v55 = vsel %vm309_vm0, %v358_v53, 0.0 }
  0xb4   : > { %375 = vadd.xlane.f32.xlu1 %v374_v51  ;;  %378 = vadd.xlane.f32.xlu0 %v377_v54 }
  0xb8   : > { %381 = vadd.xlane.f32.xlu1 %v380_v55 }
  0xc9   : > { %751 = vperm.xlu1 %1388, %v558_v63  }
  0xca   : > { %975 = vperm.xlu0 %1395, %v964_v3  }
  0xcd   : > { %754 = vperm.xlu1 %1388, %v559_v0  }
  0xce   : > { %978 = vperm.xlu0 %1395, %v965_v4  }
  0xd1   : > { %757 = vperm.xlu1 %1388, %v560_v1  }
  0xd2   : > { %1402 = vperm.xlu0 %1395, %v1684_v8  }
  0xd5   : > { %760 = vperm.xlu1 %1388, %v561_v9  }
  0xd6   : > { %984 = vperm.xlu0 %1395, %v967_v10  }
  0xd9   : > { %763 = vperm.xlu1 %1388, %v562_v11   ;;  %v555_v11 = vlaneseq }
  0xda   : > { %987 = vperm.xlu0 %1395, %v968_v12  }
  0xdd   : > { %766 = vperm.xlu1 %1388, %v1691_v14  }
  0xde   : > { %990 = vperm.xlu0 %1395, %v969_v15   ;;  %v1741_v15 = vand.u32 127, %v555_v11  ;;  %v1297_v11 = vld [vmem:[%s2163_s2] ss:$0 sm:$0xff] }
  0xe0   : > { %vm566_vm3 = vcmp.lt.s32.totalorder %v1741_v15, 46  ;;  %vm568_vm4 = vcmp.ge.s32.totalorder %v1741_v15, 46  ;;  %vm569_vm5 = vcmp.lt.s32.totalorder %v1741_v15, 92 }
  0xe1   : > { %769 = vperm.xlu1 %1388, %v1699_v17   ;;  %vm1801_vm6 = vmand %vm568_vm4, %vm569_vm5 }
  0xe2   : > { %1411 = vset.pattern.permute.xlu0 %v1542_v62 }
  0xe3   : > { %748 = vperm.xlu0 %1411, %v557_v13  }
  0xe5   : > { %1390 = vperm.xlu1 %1388, %v1707_v19  }
  0xe7   : > { %1413 = vperm.xlu0 %1411, %v1684_v8  }
  0xe9   : > { %1394 = vset.pattern.permute.xlu1 %v1543_v2 }
  0xea   : > { %972 = vperm.xlu1 %1394, %v963_v24  }
  0xeb   : > { %1418 = vperm.xlu0 %1411, %v1719_v25  }
  0xee   : > { %1397 = vperm.xlu1 %1394, %v1707_v19  }
  0xf2   : > { %981 = vperm.xlu1 %1394, %v966_v26  }
  0xf6   : > { %1407 = vperm.xlu1 %1394, %v1719_v25  }
 0x135   : > { %v361_v27 = vpop.xlane.xlu0 %360 }
 0x136   : > { %v383_v30 = vmul.f32 0.03125, %v361_v27 }
 0x138   : > { %v391_v31 = vadd.f32 1e-05, %v383_v30 }
 0x139   : > { %v364_v32 = vpop.xlane.xlu1 %363  ;;  %v367_v33 = vpop.xlane.xlu0 %366 }
 0x13a   : > { %1448 = vrsqrt.f32 %v391_v31  ;;  %v384_v34 = vmul.f32 0.03125, %v364_v32  ;;  %v385_v35 = vmul.f32 0.03125, %v367_v33 }
 0x13c   : > { %v392_v36 = vadd.f32 1e-05, %v384_v34  ;;  %v393_v37 = vadd.f32 1e-05, %v385_v35 }
 0x13d   : > { %v370_v40 = vpop.xlane.xlu1 %369  ;;  %v373_v41 = vpop.xlane.xlu0 %372 }
 0x13e   : > { %1450 = vrsqrt.f32 %v392_v36  ;;  %v386_v42 = vmul.f32 0.03125, %v370_v40  ;;  %v387_v43 = vmul.f32 0.03125, %v373_v41 }
 0x13f   : > { %1452 = vrsqrt.f32 %v393_v37 }
 0x140   : > { %v394_v44 = vadd.f32 1e-05, %v386_v42  ;;  %v395_v45 = vadd.f32 1e-05, %v387_v43 }
 0x141   : > { %v376_v46 = vpop.xlane.xlu1 %375  ;;  %v379_v47 = vpop.xlane.xlu0 %378 }
 0x142   : > { %1454 = vrsqrt.f32 %v394_v44  ;;  %v388_v50 = vmul.f32 0.03125, %v376_v46  ;;  %v389_v51 = vmul.f32 0.03125, %v379_v47 }
 0x143   : > { %1456 = vrsqrt.f32 %v395_v45 }
 0x144   : > { %v1449_v52 = vpop.eup %1448  ;;  %v396_v53 = vadd.f32 1e-05, %v388_v50  ;;  %v397_v54 = vadd.f32 1e-05, %v389_v51 }
 0x145   : > { %v382_v55 = vpop.xlane.xlu1 %381  ;;  %v407_v56 = vmul.f32 %v1449_v52, %v1613_v20 }
 0x146   : > { %1458 = vrsqrt.f32 %v396_v53  ;;  %v390_v57 = vmul.f32 0.03125, %v382_v55 }
 0x147   : > { %1460 = vrsqrt.f32 %v397_v54  ;;  %1336 = vmatprep.mubr.msk.f32.mxu0 %vm309_vm0, %v407_v56 }
 0x148   : > { %v1451_v58 = vpop.eup %1450  ;;  %v398_v59 = vadd.f32 1e-05, %v390_v57 }
 0x149   : > { %v1453_v60 = vpop.eup %1452  ;;  %v408_v61 = vmul.f32 %v1451_v58, %v1621_v28 }
 0x14a   : > { %1462 = vrsqrt.f32 %v398_v59  ;;  %v409_v62 = vmul.f32 %v1453_v60, %v1615_v21 }
 0x14b   : > { %1337 = vmatmul.mubr.msk.f32.vlgmr.msra.gmra.mrb[0].mxu0 %vm309_vm0, %v408_v61 }
 0x14c   : > { %v1455_v63 = vpop.eup %1454  ;;  %1339 = vmatprep.mubr.msk.f32.mxu0 %vm309_vm0, %v409_v62 }
 0x14d   : > { %v1457_v0 = vpop.eup %1456  ;;  %v410_v20 = vmul.f32 %v1455_v63, %v1623_v29  ;;  %v752_v29 = vpop.permute.xlu1 %751 }
 0x14e   : > { %v411_v1 = vmul.f32 %v1457_v0, %v1631_v38  ;;  %v976_v38 = vpop.permute.xlu0 %975  ;;  %vm772_vm8 = vcmp.eq.s32.totalorder %v1741_v15, %v752_v29 }
 0x14f   : > { %1340 = vmatmul.mubr.msk.f32.gmra.mrb[2].mxu0 %vm309_vm0, %v410_v20  ;;  %vm996_vm10 = vcmp.eq.s32.totalorder %v1741_v15, %v976_v38 }
 0x150   : > { %v1459_v3 = vpop.eup %1458  ;;  %1342 = vmatprep.mubr.msk.f32.mxu1 %vm309_vm0, %v411_v1 }
 0x151   : > { %v1461_v4 = vpop.eup %1460  ;;  %v412_v28 = vmul.f32 %v1459_v3, %v1633_v39  ;;  %v755_v12 = vpop.permute.xlu1 %754 }
 0x152   : > { %v413_v21 = vmul.f32 %v1461_v4, %v1641_v48  ;;  %v979_v13 = vpop.permute.xlu0 %978  ;;  %vm773_vm12 = vcmp.eq.s32.totalorder %v1741_v15, %v755_v12 }
 0x153   : > { %1343 = vmatmul.mubr.msk.f32.vlgmr.msra.gmra.mrb[0].mxu1 %vm309_vm0, %v412_v28  ;;  %vm997_vm7 = vcmp.eq.s32.totalorder %v1741_v15, %v979_v13 }
 0x154   : > { %v1463_v9 = vpop.eup %1462  ;;  %1345 = vmatprep.mubr.msk.f32.mxu1 %vm309_vm0, %v413_v21 }
 0x155   : > { %v414_v10 = vmul.f32 %v1463_v9, %v1643_v49  ;;  %v758_v24 = vpop.permute.xlu1 %757 }
 0x156   : > { %v1403_v39 = vpop.permute.xlu0 %1402  ;;  %vm774_vm13 = vcmp.eq.s32.totalorder %v1741_v15, %v758_v24 }
 0x157   : > { %1346 = vmatmul.mubr.msk.f32.gmra.mrb[2].mxu1 %vm309_vm0, %v414_v10  ;;  %v1404_v48 = vunpack.i.l.bf16 %v1403_v39  ;;  %v1405_v52 = vunpack.i.h.bf16 %v1403_v39 }
 0x159   : > { %v761_v26 = vpop.permute.xlu1 %760  ;;  %v1037_v27 = vsel %vm997_vm7, %v1404_v48, 0.0  ;;  %vm657_vm7 = vcmp.ge.s32.totalorder %v1691_v14, 0 }
 0x15a   : > { %v985_v30 = vpop.permute.xlu0 %984  ;;  %vm775_vm15 = vcmp.eq.s32.totalorder %v1741_v15, %v761_v26 }
 0x15b   : > { %vm999_vm0 = vcmp.eq.s32.totalorder %v1741_v15, %v985_v30 }
 0x15d   : > { %v764_v31 = vpop.permute.xlu1 %763 }
 0x15e   : > { %v988_v32 = vpop.permute.xlu0 %987  ;;  %vm776_vm2 = vcmp.eq.s32.totalorder %v1741_v15, %v764_v31 }
 0x15f   : > { %vm1000_vm1 = vcmp.eq.s32.totalorder %v1741_v15, %v988_v32 }
 0x161   : > { %v1744_v49 = vpop.permute.xlu1 %766 }
 0x162   : > { %v1746_v33 = vpop.permute.xlu0 %990 }
 0x165   : > { %v1748_v34 = vpop.permute.xlu1 %769 }
 0x166   : > { %v749_v35 = vpop.permute.xlu0 %748 }
 0x167   : > { %vm771_vm9 = vcmp.eq.s32.totalorder %v1741_v15, %v749_v35 }
 0x169   : > { %v1391_v36 = vpop.permute.xlu1 %1390 }
 0x16a   : > { %v1393_v37 = vunpack.i.h.bf16 %v1391_v36  ;;  %v1392_v40 = vunpack.i.l.bf16 %v1391_v36  ;;  %v1414_v54 = vpop.permute.xlu0 %1413 }
 0x16b   : > { %v1416_v56 = vunpack.i.h.bf16 %v1414_v54  ;;  %v1415_v57 = vunpack.i.l.bf16 %v1414_v54 }
 0x16c   : > { %v820_v41 = vsel %vm772_vm8, %v1393_v37, 0.0  ;;  %v819_v42 = vsel %vm771_vm9, %v1392_v40, 0.0  ;;  %vm658_vm8 = vcmp.ge.s32.totalorder %v1699_v17, 0  ;;  %vm284_vm9 = vcmask 7168  }
 0x16d   : > { %v973_v43 = vpop.permute.xlu1 %972  ;;  %v822_v59 = vsel %vm774_vm13, %v1416_v56, 0.0  ;;  %v821_v60 = vsel %vm773_vm12, %v1415_v57, 0.0  ;;  %293 = vst.msk [vmem:[#allocation3] sm:$0xff] %vm284_vm9, %v1544_v5  ;;  %294 = vst.msk [vmem:[#allocation3 + $0x8] sm:$0xff] %vm284_vm9, %v1544_v5  ;;  %vm778_vm12 = vcmp.eq.s32.totalorder %v1741_v15, %v1748_v34 }
 0x16e   : > { %vm995_vm11 = vcmp.eq.s32.totalorder %v1741_v15, %v973_v43  ;;  %v1419_v0 = vpop.permute.xlu0 %1418  ;;  %v1767_v4 = vadd.f32 %v1037_v27, %v821_v60  ;;  %285 = vst.msk [vmem:[#allocation2] sm:$0xff] %vm284_vm9, %v1544_v5  ;;  %286 = vst.msk [vmem:[#allocation2 + $0x8] sm:$0xff] %vm284_vm9, %v1544_v5 }
 0x16f   : > { %v1421_v1 = vunpack.i.h.bf16 %v1419_v0  ;;  %v1420_v3 = vunpack.i.l.bf16 %v1419_v0  ;;  %287 = vst.msk [vmem:[#allocation2 + $0x10] sm:$0xff] %vm284_vm9, %v1544_v5  ;;  %288 = vst.msk [vmem:[#allocation2 + $0x18] sm:$0xff] %vm284_vm9, %v1544_v5 }
 0x170   : > { %289 = vst.msk [vmem:[#allocation2 + $0x20] sm:$0xff] %vm284_vm9, %v1544_v5  ;;  %290 = vst.msk [vmem:[#allocation2 + $0x28] sm:$0xff] %vm284_vm9, %v1544_v5 }
 0x171   : > { %v1398_v44 = vpop.permute.xlu1 %1397  ;;  %v824_v9 = vsel %vm776_vm2, %v1421_v1, 0.0  ;;  %v823_v10 = vsel %vm775_vm15, %v1420_v3, 0.0  ;;  %291 = vst.msk [vmem:[#allocation2 + $0x30] sm:$0xff] %vm284_vm9, %v1544_v5  ;;  %292 = vst.msk [vmem:[#allocation2 + $0x38] sm:$0xff] %vm284_vm9, %v1544_v5 }
 0x172   : > { %v1400_v45 = vunpack.i.h.bf16 %v1398_v44  ;;  %v1399_v46 = vunpack.i.l.bf16 %v1398_v44  ;;  %295 = vst.msk [vmem:[#allocation3 + $0x10] sm:$0xff] %vm284_vm9, %v1544_v5  ;;  %296 = vst.msk [vmem:[#allocation3 + $0x18] sm:$0xff] %vm284_vm9, %v1544_v5 }
 0x173   : > { %297 = vst.msk [vmem:[#allocation3 + $0x20] sm:$0xff] %vm284_vm9, %v1544_v5  ;;  %298 = vst.msk [vmem:[#allocation3 + $0x28] sm:$0xff] %vm284_vm9, %v1544_v5 }
 0x174   : > { %v1036_v47 = vsel %vm996_vm10, %v1400_v45, 0.0  ;;  %v1035_v50 = vsel %vm995_vm11, %v1399_v46, 0.0  ;;  %299 = vst.msk [vmem:[#allocation3 + $0x30] sm:$0xff] %vm284_vm9, %v1544_v5  ;;  %300 = vst.msk [vmem:[#allocation3 + $0x38] sm:$0xff] %vm284_vm9, %v1544_v5  ;;  %vm1001_vm10 = vcmp.eq.s32.totalorder %v1741_v15, %v1746_v33  ;;  %vm777_vm11 = vcmp.eq.s32.totalorder %v1741_v15, %v1744_v49 }
 0x175   : > { %v1754_v51 = vadd.f32 %v1035_v50, %v819_v42  ;;  %v982_v53 = vpop.permute.xlu1 %981  ;;  %v1759_v58 = vadd.f32 %v1036_v47, %v820_v41 }
 0x176   : > { %vm998_vm14 = vcmp.eq.s32.totalorder %v1741_v15, %v982_v53 }
 0x177   : > { %v1038_v55 = vsel %vm998_vm14, %v1405_v52, 0.0  ;;  %vm1164_vm14 = vcmask 0  }
 0x178   : > { %v1765_v20 = vadd.f32 %v1038_v55, %v822_v59 }
 0x179   : > { %v1408_v61 = vpop.permute.xlu1 %1407 }
 0x17a   : > { %v1410_v62 = vunpack.i.h.bf16 %v1408_v61  ;;  %v1409_v63 = vunpack.i.l.bf16 %v1408_v61 }
 0x17c   : > { %v1039_v28 = vsel %vm999_vm0, %v1409_v63, 0.0  ;;  %v1040_v21 = vsel %vm1000_vm1, %v1410_v62, 0.0 }
 0x17d   : > { %v1771_v29 = vadd.f32 %v1040_v21, %v824_v9  ;;  %v1773_v38 = vadd.f32 %v1039_v28, %v823_v10 }
 0x21e   : > { %v1338_v12 = vpop.f32.mrb[0].mxu0 }
 0x21f   : > { %v1779_v13 = vadd.f32 %v1338_v12, %v1297_v11  ;;  %v516_v24 = vpop.f32.mrb[1].mxu0 }
 0x220   : > { %v1781_v39 = vadd.f32 %v1297_v11, %v516_v24 }
 0x221   : > { %v572_v48 = vsel %vm566_vm3, %v1779_v13, -1e+30  ;;  %v596_v44 = vsel %vm1801_vm6, %v1779_v13, -1e+30  ;;  %v1052_v42 = vmul.f32 %v1759_v58, %v1779_v13 }
 0x222   : > { %581 = vmax.xlane.f32.xlu1 %v572_v48  ;;  %v1341_v26 = vpop.f32.mrb[2].mxu0  ;;  %v571_v27 = vsel %vm566_vm3, %v1781_v39, -1e+30  ;;  %v595_v45 = vsel %vm1801_vm6, %v1781_v39, -1e+30  ;;  %v1051_v14 = vmul.f32 %v1754_v51, %v1781_v39 }
 0x223   : > { %579 = vmax.xlane.f32.xlu0 %v571_v27  ;;  %v526_v30 = vpop.f32.mrb[3].mxu0  ;;  %v1811_v46 = vadd.f32 %v1341_v26, %v1297_v11 }
 0x224   : > { %v1816_v50 = vadd.f32 %v1297_v11, %v526_v30 }
 0x225   : > { %v574_v54 = vsel %vm566_vm3, %v1811_v46, -1e+30  ;;  %v598_v60 = vsel %vm1801_vm6, %v1811_v46, -1e+30 }
 0x226   : > { %v1344_v31 = vpop.f32.mrb[0].mxu1  ;;  %v573_v56 = vsel %vm566_vm3, %v1816_v50, -1e+30  ;;  %v597_v61 = vsel %vm1801_vm6, %v1816_v50, -1e+30 }
 0x227   : > { %v1789_v32 = vadd.f32 %v1344_v31, %v1297_v11  ;;  %v536_v35 = vpop.f32.mrb[1].mxu1 }
 0x228   : > { %v1793_v36 = vadd.f32 %v1297_v11, %v536_v35 }
 0x229   : > { %v576_v37 = vsel %vm566_vm3, %v1789_v32, -1e+30  ;;  %v600_v47 = vsel %vm1801_vm6, %v1789_v32, -1e+30 }
 0x22a   : > { %589 = vmax.xlane.f32.xlu1 %v576_v37  ;;  %v1347_v40 = vpop.f32.mrb[2].mxu1  ;;  %v575_v41 = vsel %vm566_vm3, %v1793_v36, -1e+30  ;;  %v599_v52 = vsel %vm1801_vm6, %v1793_v36, -1e+30 }
 0x22b   : > { %587 = vmax.xlane.f32.xlu0 %v575_v41  ;;  %v546_v43 = vpop.f32.mrb[3].mxu1  ;;  %v1821_v53 = vadd.f32 %v1347_v40, %v1297_v11 }
 0x22c   : > { %v1826_v55 = vadd.f32 %v1297_v11, %v546_v43 }
 0x22d   : > { %v578_v57 = vsel %vm566_vm3, %v1821_v53, -1e+30  ;;  %v602_v62 = vsel %vm1801_vm6, %v1821_v53, -1e+30 }
 0x22e   : > { %605 = vmax.xlane.f32.xlu1 %v596_v44  ;;  %v577_v59 = vsel %vm566_vm3, %v1826_v55, -1e+30  ;;  %v601_v63 = vsel %vm1801_vm6, %v1826_v55, -1e+30 }
 0x22f   : > { %603 = vmax.xlane.f32.xlu0 %v595_v45 }
 0x232   : > { %613 = vmax.xlane.f32.xlu1 %v600_v47 }
 0x233   : > { %611 = vmax.xlane.f32.xlu0 %v599_v52 }
 0x236   : > { %585 = vmax.xlane.f32.xlu1 %v574_v54 }
 0x237   : > { %583 = vmax.xlane.f32.xlu0 %v573_v56 }
 0x23a   : > { %593 = vmax.xlane.f32.xlu1 %v578_v57 }
 0x23b   : > { %591 = vmax.xlane.f32.xlu0 %v577_v59 }
 0x23e   : > { %609 = vmax.xlane.f32.xlu1 %v598_v60 }
 0x23f   : > { %607 = vmax.xlane.f32.xlu0 %v597_v61 }
 0x242   : > { %617 = vmax.xlane.f32.xlu1 %v602_v62 }
 0x243   : > { %615 = vmax.xlane.f32.xlu0 %v601_v63 }
 0x2af   : > { %v1849_v0 = vpop.xlane.xlu1 %581 }
 0x2b0   : > { %v1851_v1 = vpop.xlane.xlu0 %579 }
 0x2b7   : > { %v1853_v3 = vpop.xlane.xlu1 %589 }
 0x2b8   : > { %v1855_v28 = vpop.xlane.xlu0 %587 }
 0x2bb   : > { %v1857_v21 = vpop.xlane.xlu1 %605 }
 0x2bc   : > { %v620_v9 = vsel %vm566_vm3, %v1849_v0, %v1857_v21  ;;  %v1863_v10 = vpop.xlane.xlu0 %603 }
 0x2bd   : > { %v628_v11 = vsub.f32 %v1779_v13, %v620_v9  ;;  %v619_v12 = vsel %vm566_vm3, %v1851_v1, %v1863_v10 }
 0x2be   : > { %v627_v24 = vsub.f32 %v1781_v39, %v619_v12 }
 0x2bf   : > { %v637_v48 = vmul.f32 1.442695, %v628_v11  ;;  %v1871_v26 = vpop.xlane.xlu1 %613 }
 0x2c0   : > { %v635_v27 = vmul.f32 1.442695, %v627_v24  ;;  %v624_v30 = vsel %vm566_vm3, %v1853_v3, %v1871_v26  ;;  %v1877_v31 = vpop.xlane.xlu0 %611 }
 0x2c1   : > { %1464 = vpow2.f32 %v637_v48  ;;  %v632_v35 = vsub.f32 %v1789_v32, %v624_v30  ;;  %v623_v37 = vsel %vm566_vm3, %v1855_v28, %v1877_v31 }
 0x2c2   : > { %v631_v40 = vsub.f32 %v1793_v36, %v623_v37  ;;  %1466 = vpow2.f32 %v635_v27 }
 0x2c3   : > { %v645_v41 = vmul.f32 1.442695, %v632_v35  ;;  %v1885_v43 = vpop.xlane.xlu1 %585 }
 0x2c4   : > { %v643_v44 = vmul.f32 1.442695, %v631_v40  ;;  %v1887_v45 = vpop.xlane.xlu0 %583 }
 0x2c5   : > { %1468 = vpow2.f32 %v645_v41 }
 0x2c6   : > { %1470 = vpow2.f32 %v643_v44 }
 0x2c7   : > { %v1889_v47 = vpop.xlane.xlu1 %593 }
 0x2c8   : > { %v1891_v52 = vpop.xlane.xlu0 %591 }
 0x2cb   : > { %v1465_v54 = vpop.eup %1464  ;;  %v1893_v56 = vpop.xlane.xlu1 %609 }
 0x2cc   : > { %v622_v57 = vsel %vm566_vm3, %v1885_v43, %v1893_v56  ;;  %v1899_v59 = vpop.xlane.xlu0 %607  ;;  %v676_v60 = vsel %vm566_vm3, %v1465_v54, 0.0  ;;  %v836_v61 = vsel %vm1801_vm6, %v1465_v54, 0.0  ;;  %v1467_v62 = vpop.eup %1466 }
 0x2cd   : > { %v630_v63 = vsub.f32 %v1811_v46, %v622_v57  ;;  %v621_v9 = vsel %vm566_vm3, %v1887_v45, %v1899_v59  ;;  %685 = vadd.xlane.f32.xlu1 %v676_v60  ;;  %845 = vadd.xlane.f32.xlu0 %v836_v61  ;;  %v675_v40 = vsel %vm566_vm3, %v1467_v62, 0.0 }
 0x2ce   : > { %v629_v11 = vsub.f32 %v1816_v50, %v621_v9 }
 0x2cf   : > { %v1469_v12 = vpop.eup %1468  ;;  %v641_v24 = vmul.f32 1.442695, %v630_v63  ;;  %v1911_v48 = vpop.xlane.xlu1 %617 }
 0x2d0   : > { %v639_v27 = vmul.f32 1.442695, %v629_v11  ;;  %v626_v30 = vsel %vm566_vm3, %v1889_v47, %v1911_v48  ;;  %v1917_v35 = vpop.xlane.xlu0 %615  ;;  %v680_v37 = vsel %vm566_vm3, %v1469_v12, 0.0  ;;  %v1471_v41 = vpop.eup %1470  ;;  %v840_v63 = vsel %vm1801_vm6, %v1469_v12, 0.0 }
 0x2d1   : > { %1472 = vpow2.f32 %v641_v24  ;;  %v634_v44 = vsub.f32 %v1821_v53, %v626_v30  ;;  %v625_v54 = vsel %vm566_vm3, %v1891_v52, %v1917_v35  ;;  %693 = vadd.xlane.f32.xlu1 %v680_v37  ;;  %683 = vadd.xlane.f32.xlu0 %v675_v40  ;;  %v679_v9 = vsel %vm566_vm3, %v1471_v41, 0.0 }
 0x2d2   : > { %1474 = vpow2.f32 %v639_v27  ;;  %v633_v57 = vsub.f32 %v1826_v55, %v625_v54  ;;  %v835_v11 = vsel %vm1801_vm6, %v1467_v62, 0.0  ;;  %v839_v24 = vsel %vm1801_vm6, %v1471_v41, 0.0 }
 0x2d3   : > { %v649_v60 = vmul.f32 1.442695, %v634_v44 }
 0x2d4   : > { %v647_v61 = vmul.f32 1.442695, %v633_v57 }
 0x2d5   : > { %1476 = vpow2.f32 %v649_v60  ;;  %853 = vadd.xlane.f32.xlu1 %v840_v63  ;;  %691 = vadd.xlane.f32.xlu0 %v679_v9  ;;  %v1956_v63 = vsel %vm657_vm7, 1.0, %v1544_v5  ;;  %v1959_v9 = vsel %vm658_vm8, 1.0, %v1544_v5 }
 0x2d6   : > { %1478 = vpow2.f32 %v647_v61 }
 0x2d9   : > { %843 = vadd.xlane.f32.xlu1 %v835_v11  ;;  %851 = vadd.xlane.f32.xlu0 %v839_v24  ;;  %v1427_v11 = vpack.i.bf16 %v1959_v9, %v1956_v63  ;;  %v970_v24 = vadd.s32 46, %v1699_v17  ;;  %v1054_v17 = vmul.f32 %v1765_v20, %v1811_v46 }
 0x2db   : > { %v1473_v27 = vpop.eup %1472 }
 0x2dc   : > { %v1475_v30 = vpop.eup %1474  ;;  %v678_v12 = vsel %vm566_vm3, %v1473_v27, 0.0  ;;  %v838_v54 = vsel %vm1801_vm6, %v1473_v27, 0.0  ;;  %v1053_v27 = vmul.f32 %v1767_v4, %v1816_v50 }
 0x2dd   : > { %689 = vadd.xlane.f32.xlu1 %v678_v12  ;;  %v677_v37 = vsel %vm566_vm3, %v1475_v30, 0.0  ;;  %v837_v57 = vsel %vm1801_vm6, %v1475_v30, 0.0  ;;  %v1055_v30 = vmul.f32 %v1773_v38, %v1793_v36 }
 0x2de   : > { %687 = vadd.xlane.f32.xlu0 %v677_v37 }
 0x2df   : > { %v1477_v40 = vpop.eup %1476 }
 0x2e0   : > { %v1479_v44 = vpop.eup %1478  ;;  %v682_v62 = vsel %vm566_vm3, %v1477_v40, 0.0  ;;  %v842_v60 = vsel %vm1801_vm6, %v1477_v40, 0.0 }
 0x2e1   : > { %697 = vadd.xlane.f32.xlu1 %v682_v62  ;;  %v681_v41 = vsel %vm566_vm3, %v1479_v44, 0.0  ;;  %v841_v61 = vsel %vm1801_vm6, %v1479_v44, 0.0 }
 0x2e2   : > { %695 = vadd.xlane.f32.xlu0 %v681_v41 }
 0x2e5   : > { %849 = vadd.xlane.f32.xlu1 %v838_v54 }
 0x2e6   : > { %847 = vadd.xlane.f32.xlu0 %v837_v57 }
 0x2e9   : > { %857 = vadd.xlane.f32.xlu1 %v842_v60 }
 0x2ea   : > { %855 = vadd.xlane.f32.xlu0 %v841_v61 }
 0x2fa   : > { %1428 = vperm.xlu1 %1394, %v1427_v11  }
 0x2fe   : > { %993 = vperm.xlu1 %1394, %v970_v24  }
 0x300   : > { %1423 = vperm.xlu0 %1411, %v1427_v11  }
 0x304   : > { %1447 = vset.pattern.permute.xlu0 %v1543_v2  ;;  %v1056_v2 = vmul.f32 %v1771_v29, %v1789_v32 }
 0x31f   : > { %1059 = vadd.xlane.f32.xlu0 %v1051_v14 }
 0x322   : > { %1061 = vadd.xlane.f32.xlu1 %v1052_v42 }
 0x323   : > { %1063 = vadd.xlane.f32.xlu0 %v1053_v27 }
 0x326   : > { %1067 = vadd.xlane.f32.xlu1 %v1055_v30 }
 0x327   : > { %1065 = vadd.xlane.f32.xlu0 %v1054_v17 }
 0x32b   : > { %1069 = vadd.xlane.f32.xlu0 %v1056_v2 }
 0x341   : > { %1433 = vrot.lane.b32.xlu0 %v1707_v19, %s1545_s15 }
 0x345   : > { %1438 = vrot.lane.b32.xlu0 %v1684_v8, %s1545_s15 }
 0x349   : > { %1443 = vrot.lane.b32.xlu0 %v1719_v25, %s1545_s15 }
 0x35a   : > { %v2015_v51 = vpop.xlane.xlu1 %685  ;;  %v846_v58 = vpop.xlane.xlu0 %845 }
 0x35e   : > { %v2017_v20 = vpop.xlane.xlu1 %693  ;;  %v2019_v4 = vpop.xlane.xlu0 %683 }
 0x362   : > { %v854_v29 = vpop.xlane.xlu1 %853  ;;  %v2021_v38 = vpop.xlane.xlu0 %691 }
 0x363   : > { %1480 = vlog2.f32 %v854_v29 }
 0x366   : > { %v844_v5 = vpop.xlane.xlu1 %843  ;;  %v852_v13 = vpop.xlane.xlu0 %851 }
 0x367   : > { %1482 = vlog2.f32 %v844_v5 }
 0x368   : > { %1484 = vlog2.f32 %v852_v13 }
 0x36a   : > { %v2023_v19 = vpop.xlane.xlu1 %689 }
 0x36b   : > { %v2025_v8 = vpop.xlane.xlu0 %687 }
 0x36d   : > { %v1481_v25 = vpop.eup %1480 }
 0x36e   : > { %v870_v39 = vmul.f32 0.6931472, %v1481_v25  ;;  %v2027_v32 = vpop.xlane.xlu1 %697 }
 0x36f   : > { %v2029_v36 = vpop.xlane.xlu0 %695 }
 0x370   : > { %v880_v46 = vadd.f32 %v870_v39, %v1871_v26 }
 0x371   : > { %v1483_v50 = vpop.eup %1482 }
 0x372   : > { %v1485_v12 = vpop.eup %1484  ;;  %v860_v37 = vmul.f32 0.6931472, %v1483_v50  ;;  %v850_v40 = vpop.xlane.xlu1 %849  ;;  %v888_v44 = vmul.f32 %v1713_v23, %v880_v46 }
 0x373   : > { %v868_v62 = vmul.f32 0.6931472, %v1485_v12  ;;  %1486 = vlog2.f32 %v850_v40  ;;  %v848_v41 = vpop.xlane.xlu0 %847 }
 0x374   : > { %v875_v54 = vadd.f32 %v860_v37, %v1863_v10  ;;  %1488 = vlog2.f32 %v848_v41  ;;  %909 = vrot.lane.b32.xlu0 %v888_v44, %s1545_s15 }
 0x375   : > { %v879_v57 = vadd.f32 %v868_v62, %v1877_v31 }
 0x376   : > { %v858_v60 = vpop.xlane.xlu1 %857  ;;  %v883_v61 = vmul.f32 %v1702_v18, %v875_v54 }
 0x377   : > { %1490 = vlog2.f32 %v858_v60  ;;  %v856_v26 = vpop.xlane.xlu0 %855  ;;  %v887_v24 = vmul.f32 %v1710_v22, %v879_v57 }
 0x378   : > { %899 = vrot.lane.b32.xlu0 %v883_v61, %s1545_s15  ;;  %1492 = vlog2.f32 %v856_v26 }
 0x379   : > { %1494 = vlog2.f32 %v846_v58 }
 0x37a   : > { %v1429_v11 = vpop.permute.xlu1 %1428  ;;  %1496 = vlog2.f32 %v2017_v20 }
 0x37b   : > { %v1430_v10 = vunpack.i.l.bf16 %v1429_v11  ;;  %v1431_v60 = vunpack.i.h.bf16 %v1429_v11  ;;  %v1110_v11 = vld [vmem:[#allocation3 + $0x10] sm:$0xff]  ;;  %1498 = vlog2.f32 %v2019_v4 }
 0x37c   : > { %907 = vrot.lane.b32.xlu0 %v887_v24, %s1545_s15  ;;  %1500 = vlog2.f32 %v2021_v38  ;;  %v1088_v38 = vld [vmem:[#allocation2 + $0x28] sm:$0xff] }
 0x37d   : > { %v1487_v14 = vpop.eup %1486  ;;  %v1041_v5 = vsel %vm1001_vm10, %v1430_v10, 0.0  ;;  %1502 = vlog2.f32 %v2023_v19 }
 0x37e   : > { %v1489_v42 = vpop.eup %1488  ;;  %v866_v27 = vmul.f32 0.6931472, %v1487_v14  ;;  %v994_v41 = vpop.permute.xlu1 %993  ;;  %1504 = vlog2.f32 %v2025_v8 }
 0x37f   : > { %v864_v30 = vmul.f32 0.6931472, %v1489_v42  ;;  %v1424_v17 = vpop.permute.xlu0 %1423  ;;  %vm1002_vm13 = vcmp.eq.s32.totalorder %v1741_v15, %v994_v41  ;;  %1506 = vlog2.f32 %v2027_v32 }
 0x380   : > { %v878_v31 = vadd.f32 %v866_v27, %v1893_v56  ;;  %v1425_v2 = vunpack.i.l.bf16 %v1424_v17  ;;  %v1426_v54 = vunpack.i.h.bf16 %v1424_v17  ;;  %v1042_v26 = vsel %vm1002_vm13, %v1431_v60, 0.0  ;;  %v1108_v27 = vld [vmem:[#allocation3] sm:$0xff] }
 0x381   : > { %v1491_v29 = vpop.eup %1490  ;;  %v877_v13 = vadd.f32 %v864_v30, %v1899_v59  ;;  %v1109_v30 = vld [vmem:[#allocation3 + $0x8] sm:$0xff]  ;;  %1508 = vlog2.f32 %v2029_v36 }
 0x382   : > { %v874_v25 = vmul.f32 0.6931472, %v1491_v29  ;;  %v825_v39 = vsel %vm777_vm11, %v1425_v2, 0.0  ;;  %v886_v46 = vmul.f32 %v1680_v7, %v878_v31  ;;  %v1493_v50 = vpop.eup %1492  ;;  %v1111_v29 = vld [vmem:[#allocation3 + $0x18] sm:$0xff]  ;;  %1510 = vlog2.f32 %v2015_v51  ;;  %v1089_v51 = vld [vmem:[#allocation2 + $0x30] sm:$0xff] }
 0x383   : > { %v1049_v12 = vadd.f32 %v1041_v5, %v825_v39  ;;  %v872_v37 = vmul.f32 0.6931472, %v1493_v50  ;;  %v885_v40 = vmul.f32 %v1677_v6, %v877_v13  ;;  %v1495_v58 = vpop.eup %1494  ;;  %v1113_v50 = vld [vmem:[#allocation3 + $0x28] sm:$0xff] }
 0x384   : > { %905 = vrot.lane.b32.xlu0 %v886_v46, %s1545_s15  ;;  %v882_v56 = vadd.f32 %v874_v25, %v1911_v48  ;;  %v862_v44 = vmul.f32 0.6931472, %v1495_v58  ;;  %v1112_v46 = vld [vmem:[#allocation3 + $0x20] sm:$0xff] }
 0x385   : > { %v1057_v33 = vmul.f32 %v1049_v12, %v1826_v55  ;;  %v881_v49 = vadd.f32 %v872_v37, %v1917_v35 }
 0x386   : > { %v890_v59 = vmul.f32 %v1959_v9, %v882_v56  ;;  %v876_v55 = vadd.f32 %v862_v44, %v1857_v21  ;;  %v826_v21 = vsel %vm778_vm12, %v1426_v54, 0.0 }
 0x387   : > { %1071 = vadd.xlane.f32.xlu1 %v1057_v33  ;;  %v889_v62 = vmul.f32 %v1956_v63, %v881_v49  ;;  %v1050_v24 = vadd.f32 %v1042_v26, %v826_v21 }
 0x388   : > { %903 = vrot.lane.b32.xlu0 %v885_v40, %s1545_s15  ;;  %v884_v48 = vmul.f32 %v1696_v16, %v876_v55  ;;  %v1497_v40 = vpop.eup %1496 }
 0x389   : > { %v1058_v10 = vmul.f32 %v1050_v24, %v1821_v53  ;;  %v710_v49 = vmul.f32 0.6931472, %v1497_v40 }
 0x38b   : > { %v720_v44 = vadd.f32 %v710_v49, %v1853_v3 }
 0x38c   : > { %913 = vrot.lane.b32.xlu0 %v890_v59, %s1545_s15  ;;  %v1499_v59 = vpop.eup %1498 }
 0x38d   : > { %v700_v58 = vmul.f32 0.6931472, %v1499_v59 }
 0x38f   : > { %v715_v20 = vadd.f32 %v700_v58, %v1851_v1 }
 0x390   : > { %911 = vrot.lane.b32.xlu0 %v889_v62, %s1545_s15  ;;  %v1501_v62 = vpop.eup %1500 }
 0x391   : > { %v708_v55 = vmul.f32 0.6931472, %v1501_v62  ;;  %v723_v60 = vmul.f32 %v1702_v18, %v715_v20  ;;  %v1503_v21 = vpop.eup %1502 }
 0x393   : > { %v719_v19 = vadd.f32 %v708_v55, %v1855_v28  ;;  %v1087_v28 = vld [vmem:[#allocation2 + $0x20] sm:$0xff] }
 0x394   : > { %945 = vrot.lane.b32.xlu0 %v1959_v9, %s1545_s15 }
 0x395   : > { %v727_v32 = vmul.f32 %v1710_v22, %v719_v19 }
 0x398   : > { %901 = vrot.lane.b32.xlu1 %v884_v48, %s1545_s15  ;;  %v728_v48 = vmul.f32 %v1713_v23, %v720_v44 }
 0x3ac   : > { %v2062_v35 = vpop.xlane.xlu0 %1059 }
 0x3af   : > { %v2097_v3 = vpop.xlane.xlu1 %1061 }
 0x3b0   : > { %v2064_v57 = vpop.xlane.xlu0 %1063 }
 0x3b4   : > { %v2069_v61 = vpop.xlane.xlu0 %1065 }
 0x3b8   : > { %v1070_v14 = vpop.xlane.xlu0 %1069 }
 0x3bc   : > { %1073 = vadd.xlane.f32.xlu1 %v1058_v10  ;;  %v1434_v42 = vpop.permute.xlu0 %1433  ;;  %v1083_v10 = vld [vmem:[#allocation2] sm:$0xff] }
 0x3bd   : > { %v1512_v17 = vadd.high.f32.bf16 %v1696_v16, %v1434_v42  ;;  %v1513_v31 = vadd.low.f32.bf16 %v1702_v18, %v1434_v42  ;;  %v1505_v42 = vpop.eup %1504 }
 0x3bf   : > { %v1117_v2 = vadd.f32 %v1512_v17, %v1109_v30  ;;  %v1116_v15 = vadd.f32 %v1513_v31, %v1108_v27  ;;  %v1068_v30 = vpop.xlane.xlu1 %1067  ;;  %v704_v17 = vmul.f32 0.6931472, %v1505_v42 }
 0x3c0   : > { %v1439_v34 = vpop.permute.xlu0 %1438 }
 0x3c1   : > { %1125 = vst.msk [vmem:[#allocation3 + $0x8] sm:$0xff] %vm284_vm9, %v1117_v2  ;;  %1124 = vst.msk [vmem:[#allocation3] sm:$0xff] %vm284_vm9, %v1116_v15  ;;  %v1514_v5 = vadd.high.f32.bf16 %v1680_v7, %v1439_v34  ;;  %v1515_v53 = vadd.low.f32.bf16 %v1677_v6, %v1439_v34  ;;  %v1507_v2 = vpop.eup %1506 }
 0x3c3   : > { %v1119_v25 = vadd.f32 %v1514_v5, %v1111_v29  ;;  %v1118_v39 = vadd.f32 %v1515_v53, %v1110_v11  ;;  %v714_v11 = vmul.f32 0.6931472, %v1507_v2  ;;  %v1086_v53 = vld [vmem:[#allocation2 + $0x18] sm:$0xff] }
 0x3c4   : > { %v1444_v13 = vpop.permute.xlu0 %1443 }
 0x3c5   : > { %1127 = vst.msk [vmem:[#allocation3 + $0x18] sm:$0xff] %vm284_vm9, %v1119_v25  ;;  %1126 = vst.msk [vmem:[#allocation3 + $0x10] sm:$0xff] %vm284_vm9, %v1118_v39  ;;  %v1516_v12 = vadd.high.f32.bf16 %v1713_v23, %v1444_v13  ;;  %v1517_v33 = vadd.low.f32.bf16 %v1710_v22, %v1444_v13  ;;  %v706_v23 = vmul.f32 0.6931472, %v1503_v21  ;;  %v717_v22 = vadd.f32 %v704_v17, %v1887_v45 }
 0x3c6   : > { %v722_v39 = vadd.f32 %v714_v11, %v1889_v47  ;;  %v1509_v47 = vpop.eup %1508 }
 0x3c7   : > { %v1121_v56 = vadd.f32 %v1516_v12, %v1113_v50  ;;  %v1120_v37 = vadd.f32 %v1517_v33, %v1112_v46  ;;  %v718_v34 = vadd.f32 %v706_v23, %v1885_v43  ;;  %v725_v25 = vmul.f32 %v1677_v6, %v717_v22  ;;  %v1085_v12 = vld [vmem:[#allocation2 + $0x10] sm:$0xff] }
 0x3c8   : > { %v730_v45 = vmul.f32 %v1959_v9, %v722_v39  ;;  %v712_v49 = vmul.f32 0.6931472, %v1509_v47  ;;  %v1167_v23 = vld [vmem:[#allocation3 + $0x8] sm:$0xff] }
 0x3c9   : > { %1129 = vst.msk [vmem:[#allocation3 + $0x28] sm:$0xff] %vm284_vm9, %v1121_v56  ;;  %1128 = vst.msk [vmem:[#allocation3 + $0x20] sm:$0xff] %vm284_vm9, %v1120_v37 }
 0x3ca   : > { %v721_v58 = vadd.f32 %v712_v49, %v1891_v52 }
 0x3cc   : > { %v729_v62 = vmul.f32 %v1956_v63, %v721_v58  ;;  %v1169_v11 = vld [vmem:[#allocation3 + $0x18] sm:$0xff] }
 0x3cd   : > { %943 = vrot.lane.b32.xlu1 %v1956_v63, %s1545_s15  ;;  %v1179_v39 = vsel %vm284_vm9, %v1169_v11, 0.0 }
 0x3e6   : > { %v910_v41 = vpop.permute.xlu0 %909 }
 0x3e7   : > { %v928_v4 = vadd.f32 %v910_v41, %v728_v48 }
 0x3e9   : > { %v1080_v54 = vsub.f32 %v928_v4, %v1070_v14 }
 0x3ea   : > { %v900_v26 = vpop.permute.xlu0 %899 }
 0x3eb   : > { %v1096_v8 = vadd.f32 %v1088_v38, %v1080_v54  ;;  %v923_v24 = vadd.f32 %v900_v26, %v723_v60  ;;  %v1084_v60 = vld [vmem:[#allocation2 + $0x8] sm:$0xff] }
 0x3ed   : > { %1105 = vst.msk [vmem:[#allocation2 + $0x28] sm:$0xff] %vm284_vm9, %v1096_v8  ;;  %v1075_v1 = vsub.f32 %v923_v24, %v2062_v35  ;;  %v726_v35 = vmul.f32 %v1680_v7, %v718_v34 }
 0x3ee   : > { %v908_v14 = vpop.permute.xlu0 %907 }
 0x3ef   : > { %v1091_v27 = vadd.f32 %v1083_v10, %v1075_v1  ;;  %v927_v18 = vadd.f32 %v908_v14, %v727_v32  ;;  %v1175_v14 = vsel %vm284_vm9, %v1167_v23, 0.0 }
 0x3f1   : > { %1100 = vst.msk [vmem:[#allocation2] sm:$0xff] %vm284_vm9, %v1091_v27  ;;  %v1079_v31 = vsub.f32 %v927_v18, %v1068_v30  ;;  %v1168_v27 = vld [vmem:[#allocation3 + $0x10] sm:$0xff] }
 0x3f2   : > { %v1177_v2 = vsel %vm284_vm9, %v1168_v27, 0.0 }
 0x3f3   : > { %v1095_v15 = vadd.f32 %v1087_v28, %v1079_v31  ;;  %v1090_v31 = vld [vmem:[#allocation2 + $0x38] sm:$0xff] }
 0x3f5   : > { %1104 = vst.msk [vmem:[#allocation2 + $0x20] sm:$0xff] %vm284_vm9, %v1095_v15 }
 0x3f6   : > { %v906_v29 = vpop.permute.xlu0 %905 }
 0x3f7   : > { %v926_v5 = vadd.f32 %v906_v29, %v726_v35 }
 0x3f8   : > { %v1135_v26 = vld [vmem:[#allocation2] sm:$0xff] }
 0x3f9   : > { %v1078_v13 = vsub.f32 %v926_v5, %v2069_v61  ;;  %v1115_v61 = vld [vmem:[#allocation3 + $0x38] sm:$0xff]  ;;  %v1143_v8 = vsel %vm284_vm9, %v1135_v26, 0.0  ;;  %v1140_v5 = vld [vmem:[#allocation2 + $0x28] sm:$0xff] }
 0x3fa   : > { %v904_v46 = vpop.permute.xlu0 %903 }
 0x3fb   : > { %v1094_v43 = vadd.f32 %v1086_v53, %v1078_v13  ;;  %v925_v50 = vadd.f32 %v904_v46, %v725_v25  ;;  %v1114_v13 = vld [vmem:[#allocation3 + $0x30] sm:$0xff] }
 0x3fc   : > { %v1139_v28 = vld [vmem:[#allocation2 + $0x20] sm:$0xff] }
 0x3fd   : > { %1103 = vst.msk [vmem:[#allocation2 + $0x18] sm:$0xff] %vm284_vm9, %v1094_v43  ;;  %v1077_v7 = vsub.f32 %v925_v50, %v2064_v57  ;;  %v1511_v57 = vpop.eup %1510  ;;  %v1150_v35 = vsel %vm284_vm9, %v1139_v28, 0.0  ;;  %v1170_v43 = vld [vmem:[#allocation3 + $0x20] sm:$0xff]  ;;  %v1152_v50 = vsel %vm284_vm9, %v1140_v5, 0.0 }
 0x3fe   : > { %v914_v33 = vpop.permute.xlu0 %913  ;;  %v702_v44 = vmul.f32 0.6931472, %v1511_v57 }
 0x3ff   : > { %v1093_v56 = vadd.f32 %v1085_v12, %v1077_v7  ;;  %v930_v37 = vadd.f32 %v914_v33, %v730_v45 }
 0x400   : > { %v716_v48 = vadd.f32 %v702_v44, %v1849_v0 }
 0x401   : > { %1102 = vst.msk [vmem:[#allocation2 + $0x10] sm:$0xff] %vm284_vm9, %v1093_v56  ;;  %v1181_v56 = vsel %vm284_vm9, %v1170_v43, 0.0 }
 0x402   : > { %v912_v6 = vpop.permute.xlu0 %911  ;;  %v724_v38 = vmul.f32 %v1696_v16, %v716_v48  ;;  %v1166_v16 = vld [vmem:[#allocation3] sm:$0xff] }
 0x403   : > { %v929_v55 = vadd.f32 %v912_v6, %v729_v62 }
 0x404   : > { %v1138_v32 = vld [vmem:[#allocation2 + $0x18] sm:$0xff] }
 0x405   : > { %v1148_v18 = vsel %vm284_vm9, %v1138_v32, 0.0 }
 0x406   : > { %v946_v40 = vpop.permute.xlu0 %945 }
 0x407   : > { %v962_v36 = vadd.f32 %v1959_v9, %v946_v40 }
 0x408   : > { %v1137_v24 = vld [vmem:[#allocation2 + $0x10] sm:$0xff] }
 0x409   : > { %v1123_v59 = vadd.f32 %v1115_v61, %v962_v36  ;;  %v1146_v1 = vsel %vm284_vm9, %v1137_v24, 0.0 }
 0x40b   : > { %1131 = vst.msk [vmem:[#allocation3 + $0x38] sm:$0xff] %vm284_vm9, %v1123_v59 }
 0x412   : > { %v1173_v59 = vld [vmem:[#allocation3 + $0x38] sm:$0xff] }
 0x414   : > { %v1072_v20 = vpop.xlane.xlu1 %1071 }
 0x415   : > { %v1081_v41 = vsub.f32 %v929_v55, %v1072_v20  ;;  %v1187_v55 = vsel %vm284_vm9, %v1173_v59, 0.0 }
 0x417   : > { %v1097_v4 = vadd.f32 %v1089_v51, %v1081_v41 }
 0x418   : > { %v902_v9 = vpop.permute.xlu1 %901 }
 0x419   : > { %1106 = vst.msk [vmem:[#allocation2 + $0x30] sm:$0xff] %vm284_vm9, %v1097_v4  ;;  %v924_v54 = vadd.f32 %v902_v9, %v724_v38 }
 0x41b   : > { %v1076_v19 = vsub.f32 %v924_v54, %v2097_v3  ;;  %v1174_v3 = vsel %vm284_vm9, %v1166_v16, 0.0 }
 0x41c   : > { %v1176_v30 = vadd.f32 %v1175_v14, %v1174_v3 }
 0x41d   : > { %v1092_v52 = vadd.f32 %v1084_v60, %v1076_v19 }
 0x41e   : > { %v1178_v29 = vadd.f32 %v1177_v2, %v1176_v30 }
 0x41f   : > { %1101 = vst.msk [vmem:[#allocation2 + $0x8] sm:$0xff] %vm284_vm9, %v1092_v52 }
 0x420   : > { %v1180_v7 = vadd.f32 %v1179_v39, %v1178_v29  ;;  %v1141_v45 = vld [vmem:[#allocation2 + $0x30] sm:$0xff] }
 0x421   : > { %v1154_v6 = vsel %vm284_vm9, %v1141_v45, 0.0 }
 0x422   : > { %v1182_v47 = vadd.f32 %v1181_v56, %v1180_v7 }
 0x426   : > { %v1136_v21 = vld [vmem:[#allocation2 + $0x8] sm:$0xff] }
 0x427   : > { %v1144_v0 = vsel %vm284_vm9, %v1136_v21, 0.0 }
 0x428   : > { %v1145_v10 = vadd.f32 %v1144_v0, %v1143_v8 }
 0x42a   : > { %v1147_v42 = vadd.f32 %v1146_v1, %v1145_v10 }
 0x42c   : > { %v1149_v17 = vadd.f32 %v1148_v18, %v1147_v42 }
 0x42e   : > { %v1151_v53 = vadd.f32 %v1150_v35, %v1149_v17 }
 0x430   : > { %v1153_v33 = vadd.f32 %v1152_v50, %v1151_v53 }
 0x432   : > { %v1155_v40 = vadd.f32 %v1154_v6, %v1153_v33 }
 0x449   : > { %v1074_v34 = vpop.xlane.xlu1 %1073 }
 0x44a   : > { %v1082_v15 = vsub.f32 %v930_v37, %v1074_v34  ;;  %v1171_v37 = vld [vmem:[#allocation3 + $0x28] sm:$0xff] }
 0x44c   : > { %v1098_v22 = vadd.f32 %v1090_v31, %v1082_v15 }
 0x44d   : > { %v944_v25 = vpop.permute.xlu1 %943 }
 0x44e   : > { %1107 = vst.msk [vmem:[#allocation2 + $0x38] sm:$0xff] %vm284_vm9, %v1098_v22  ;;  %v961_v46 = vadd.f32 %v1956_v63, %v944_v25  ;;  %v1183_v63 = vsel %vm284_vm9, %v1171_v37, 0.0 }
 0x44f   : > { %v1184_v44 = vadd.f32 %v1183_v63, %v1182_v47 }
 0x450   : > { %v1122_v12 = vadd.f32 %v1114_v13, %v961_v46 }
 0x452   : > { %1130 = vst.msk [vmem:[#allocation3 + $0x30] sm:$0xff] %vm284_vm9, %v1122_v12 }
 0x455   : > { %v1142_v61 = vld [vmem:[#allocation2 + $0x38] sm:$0xff] }
 0x456   : > { %v1156_v36 = vsel %vm284_vm9, %v1142_v61, 0.0 }
 0x457   : > { %v1157_v49 = vadd.f32 %v1156_v36, %v1155_v40 }
 0x459   : > { %v1158_v57 = vrot.slane %v1157_v49, 4  ;;  %v1172_v58 = vld [vmem:[#allocation3 + $0x30] sm:$0xff] }
 0x45a   : > { %v1185_v62 = vsel %vm284_vm9, %v1172_v58, 0.0 }
 0x45b   : > { %v1159_v48 = vadd.f32 %v1158_v57, %v1157_v49  ;;  %v1186_v51 = vadd.f32 %v1185_v62, %v1184_v44 }
 0x45d   : > { %v1160_v20 = vrot.slane %v1159_v48, 2  ;;  %v1188_v41 = vadd.f32 %v1187_v55, %v1186_v51 }
 0x45f   : > { %v1161_v4 = vadd.f32 %v1160_v20, %v1159_v48  ;;  %v1189_v38 = vrot.slane %v1188_v41, 4 }
 0x461   : > { %v1162_v9 = vrot.slane %v1161_v4, 1  ;;  %v1190_v54 = vadd.f32 %v1189_v38, %v1188_v41 }
 0x463   : > { %v1163_v60 = vadd.f32 %v1162_v9, %v1161_v4  ;;  %v1191_v19 = vrot.slane %v1190_v54, 2 }
 0x465   : > { %1165 = vst.msk [vmem:[%s276_s22] sm:$0x1] %vm1164_vm14, %v1163_v60  ;;  %v1192_v52 = vadd.f32 %v1191_v19, %v1190_v54 }
 0x467   : > { %v1193_v21 = vrot.slane %v1192_v52, 1 }
 0x469   : > { %v1194_v26 = vadd.f32 %v1193_v21, %v1192_v52 }
 0x46b   : > { %1195 = vst.msk [vmem:[%s279_s25] sm:$0x1] %vm1164_vm14, %v1194_v26 }
 0x46c PF: > { %s16_s20 = sadd.s32 1, %s1540_s20   ;;  %s2169_s18 = smov %s1536_s19 }
 0x46d   : > { %p13_p6 = scmp.ge.s32.totalorder %s16_s20, 4   ;;  %s2170_s19 = smov %s2172_s21 }
 0x46f   :  { %15 = sbr.rel (!%p13_p6) target bundleno = 2 (0x2), region = 89 }

</bundles_post_ra>
